<compile_context>
chip_gen: v6e
topology: v6e:2x2x1
jax: 0.10.0
libtpu: 0.0.40
codegen_flags: <defaults>
</compile_context>

<pallas_src>
import functools

import jax
import jax.numpy as jnp
from jax import lax
from jax.experimental import pallas as pl
from jax.experimental.pallas import tpu as pltpu

NUM_HEADS = 2
NEG_SLOPE = 0.2      # GATConv default negative_slope
NEG_INF = -1e30


def _round_up(v, m):
    return ((v + m - 1) // m) * m


def _select_tiles(n):
    """Generation-aware (tm, tk, vmem_limit_bytes) for the 2-D tiling."""
    kind = ""
    try:
        kind = jax.devices()[0].device_kind.lower()
    except Exception:
        pass
    big_vmem = any(t in kind for t in ("v4", "v5", "v6"))
    if big_vmem:                       # 128 MiB VMEM per TensorCore
        tm_t, tk_t, vmem = 512, 1024, 100 * 1024 * 1024
        nb = max(1, pl.cdiv(n, tm_t))
    else:                              # v7x: 64 MiB VMEM, 2 TCs -> >=2 row blocks
        tm_t, tk_t, vmem = 256, 512, 48 * 1024 * 1024
        nb = max(2, pl.cdiv(n, tm_t))
    tm = min(tm_t, _round_up(pl.cdiv(n, nb), 16))   # 16 = bf16-native sublane tile
    tk = min(tk_t, _round_up(n, 128))
    return tm, tk, vmem


def _online_attn_step(a_dst_ref, adjw_ref, a_srcT_ref, xp_ref, ce_ref,
                      m_ref, l_ref, acc_ref, *, f_out):
    """One (row-block, src-column-block) step of edge-masked online softmax."""
    H = NUM_HEADS
    j = pl.program_id(1)

    @pl.when(j == 0)
    def _():
        m_ref[...] = jnp.full_like(m_ref, -jnp.inf)
        l_ref[...] = jnp.zeros_like(l_ref)
        acc_ref[...] = jnp.zeros_like(acc_ref)

    adjw_raw = adjw_ref[...].astype(jnp.float32)          # [tm, tk] (bf16 -> f32)
    edge_ok = jnp.logical_not(jnp.isnan(adjw_raw))        # NaN sentinel = no edge
    adjw = jnp.where(edge_ok, adjw_raw, 0.0)

    a_dst = a_dst_ref[...]                                # [tm, H]
    a_srcT = a_srcT_ref[...]                              # [H, tk]
    xp = xp_ref[...]                                      # [tk, hf_pad]

    tm, hf_pad = acc_ref.shape
    col = lax.broadcasted_iota(jnp.int32, (1, hf_pad), 1)

    corr_wide = jnp.ones((tm, hf_pad), jnp.float32)
    upd = jnp.zeros((tm, hf_pad), jnp.float32)

    for h in range(H):                                    # static unroll over heads
        # e[i, j] = a_dst[i] + a_src[j] + c_edge[h] * w[i, j]
        e = a_dst[:, h:h + 1] + a_srcT[h:h + 1, :] + adjw * ce_ref[h]
        e = jnp.where(e > 0, e, NEG_SLOPE * e)            # LeakyReLU
        e = jnp.where(edge_ok, e, NEG_INF)                # mask non-edges

        m_old = m_ref[h]                                  # [tm, 1]
        m_new = jnp.maximum(m_old, jnp.max(e, axis=-1, keepdims=True))
        corr = jnp.exp(m_old - m_new)
        p = jnp.exp(e - m_new)                            # unnormalized weights
        l_ref[h] = corr * l_ref[h] + jnp.sum(p, axis=-1, keepdims=True)
        m_ref[h] = m_new

        # Head-h value aggregation written lane-dense into the full-width acc.
        # (HF=16 per layer, so the masked full-width matmul costs no extra MXU
        #  lanes — switch to per-head column slices only if f_out >= 64.)
        sel = (col >= h * f_out) & (col < (h + 1) * f_out)
        xp_h = jnp.where(sel, xp, 0.0)
        corr_wide = jnp.where(sel, corr, corr_wide)
        upd = upd + jnp.dot(p, xp_h, preferred_element_type=jnp.float32)

    acc_ref[...] = acc_ref[...] * corr_wide + upd


def _finalize(l_ref, acc_ref, b_ref, *, f_out):
    """Deferred softmax normalization + bias + ReLU (runs on the last j)."""
    H = NUM_HEADS
    tm, hf_pad = acc_ref.shape
    col = lax.broadcasted_iota(jnp.int32, (1, hf_pad), 1)
    inv_wide = jnp.ones((tm, hf_pad), jnp.float32)
    for h in range(H):
        sel = (col >= h * f_out) & (col < (h + 1) * f_out)
        inv_wide = jnp.where(sel, pl.reciprocal(l_ref[h], approx=True), inv_wide)
    out = acc_ref[...] * inv_wide + b_ref[...]
    return jnp.maximum(out, 0.0)                          # F.relu (dropout = eval)


def gat_layer_kernel(a_dst_ref, adjw_ref, a_srcT_ref, xp_ref, ce_ref, b_ref,
                     out_ref, m_ref, l_ref, acc_ref, *, f_out):
    _online_attn_step(a_dst_ref, adjw_ref, a_srcT_ref, xp_ref, ce_ref,
                      m_ref, l_ref, acc_ref, f_out=f_out)

    @pl.when(pl.program_id(1) == pl.num_programs(1) - 1)
    def _():
        out_ref[...] = _finalize(l_ref, acc_ref, b_ref, f_out=f_out)


def gat_layer_fc_kernel(a_dst_ref, adjw_ref, a_srcT_ref, xp_ref, ce_ref, b_ref,
                        wfc_ref, bfc_ref, out_ref, m_ref, l_ref, acc_ref, *,
                        f_out):
    _online_attn_step(a_dst_ref, adjw_ref, a_srcT_ref, xp_ref, ce_ref,
                      m_ref, l_ref, acc_ref, f_out=f_out)

    @pl.when(pl.program_id(1) == pl.num_programs(1) - 1)
    def _():
        hid = _finalize(l_ref, acc_ref, b_ref, f_out=f_out)
        out_ref[...] = (jnp.dot(hid, wfc_ref[...],
                                preferred_element_type=jnp.float32)
                        + bfc_ref[...])


def _gat_layer_call(a_dst, adjw, a_srcT, xp_src, ce, b, *, tm, tk, f_out,
                    vmem_bytes, fc=None):
    n_pad, H = a_dst.shape
    ns_pad = adjw.shape[1]
    hf_pad = xp_src.shape[1]
    nr = n_pad // tm
    nk = ns_pad // tk

    def resident(arr):
        nd = arr.ndim
        return pl.BlockSpec(arr.shape, lambda *_: (0,) * nd)

    in_specs = [
        pl.BlockSpec((tm, H), lambda i, j: (i, 0)),        # a_dst rows
        pl.BlockSpec((tm, tk), lambda i, j: (i, j)),       # bf16 NaN-sentinel adjacency
        pl.BlockSpec((H, tk), lambda i, j: (0, j)),        # a_src columns
        pl.BlockSpec((tk, hf_pad), lambda i, j: (j, 0)),   # projected sources
        pl.BlockSpec(memory_space=pltpu.MemorySpace.SMEM), # per-head edge coeff
        resident(b),                                       # bias (lane-padded)
    ]
    args = [a_dst, adjw, a_srcT, xp_src, ce, b]

    if fc is None:
        kernel = functools.partial(gat_layer_kernel, f_out=f_out)
        out_cols = hf_pad
    else:
        wfc, bfc = fc
        in_specs += [resident(wfc), resident(bfc)]
        args += [wfc, bfc]
        kernel = functools.partial(gat_layer_fc_kernel, f_out=f_out)
        out_cols = wfc.shape[1]

    return pl.pallas_call(
        kernel,
        grid=(nr, nk),
        in_specs=in_specs,
        out_specs=pl.BlockSpec((tm, out_cols), lambda i, j: (i, 0)),
        out_shape=jax.ShapeDtypeStruct((n_pad, out_cols), jnp.float32),
        scratch_shapes=[
            pltpu.VMEM((NUM_HEADS, tm, 1), jnp.float32),   # running max m
            pltpu.VMEM((NUM_HEADS, tm, 1), jnp.float32),   # running sum l
            pltpu.VMEM((tm, hf_pad), jnp.float32),         # unnormalized acc
        ],
        compiler_params=pltpu.CompilerParams(
            dimension_semantics=("parallel", "arbitrary"),
            vmem_limit_bytes=vmem_bytes),
    )(*args)


def gat_net_forward(x, edge_index, edge_weight, params):
    N = x.shape[0]
    H = NUM_HEADS
    src, dst = edge_index[0], edge_index[1]

    # ---- glue (XLA): sparse edge list -> dense [N_dst, N_src] weight matrix.
    # Self loops follow PyG add_self_loops(fill_value='mean'): per-destination
    # mean of incoming edge weights, 0 for nodes with no incoming edges.
    not_loop = src != dst
    deg = jnp.zeros((N,), jnp.float32).at[dst].add(jnp.where(not_loop, 1.0, 0.0))
    wsum = jnp.zeros((N,), jnp.float32).at[dst].add(
        jnp.where(not_loop, edge_weight, 0.0))
    loop_w = jnp.where(deg > 0, wsum / jnp.maximum(deg, 1.0), 0.0)

    tm, tk, vmem = _select_tiles(N)
    n_pad = _round_up(N, tm)
    ns_pad = _round_up(N, tk)

    adjw = jnp.full((n_pad, ns_pad), jnp.nan, jnp.float32)
    adjw = adjw.at[dst, src].set(edge_weight)
    diag = jnp.arange(N)
    adjw = adjw.at[diag, diag].set(loop_w)
    adjw = adjw.astype(jnp.bfloat16)          # halves the dominant HBM stream

    def projections(feat, w, att_s, att_d, bias, hf_pad):
        # Hoisted, block-invariant projections (done once per layer in XLA).
        n = feat.shape[0]
        Hh, f = att_s.shape
        hf = Hh * f
        xp = feat @ w                                          # [n, hf]
        xp3 = xp.reshape(n, Hh, f)
        a_src = jnp.einsum('nhf,hf->hn', xp3, att_s)           # [H, n]
        a_dst = jnp.einsum('nhf,hf->nh', xp3, att_d)           # [n, H]
        xp_p = jnp.zeros((ns_pad, hf_pad), jnp.float32).at[:n, :hf].set(xp)
        a_srcT_p = jnp.zeros((Hh, ns_pad), jnp.float32).at[:, :n].set(a_src)
        a_dst_p = jnp.zeros((n_pad, Hh), jnp.float32).at[:n, :].set(a_dst)
        b_p = jnp.zeros((1, hf_pad), jnp.float32).at[:, :hf].set(bias)
        return xp_p, a_srcT_p, a_dst_p, b_p, f

    # ---- layer 1
    hf1_pad = _round_up(params['w1'].shape[1], 128)
    xp1, a_srcT1, a_dst1, b1, f1 = projections(
        x, params['w1'], params['as1'], params['ad1'], params['b1'], hf1_pad)
    h1_pad = _gat_layer_call(a_dst1, adjw, a_srcT1, xp1, params['ce1'], b1,
                             tm=tm, tk=tk, f_out=f1, vmem_bytes=vmem)
    h1 = h1_pad[:N, :params['w1'].shape[1]]   # strip lane / row padding

    # ---- layer 2 with the final nn.Linear fused (padded to 128 output lanes)
    hf2_pad = _round_up(params['w2'].shape[1], 128)
    out_feats = params['wfc'].shape[1]
    out_pad_cols = _round_up(out_feats, 128)
    wfc_pad = jnp.zeros((hf2_pad, out_pad_cols), jnp.float32).at[
        :params['wfc'].shape[0], :out_feats].set(params['wfc'])
    bfc_pad = jnp.zeros((1, out_pad_cols), jnp.float32).at[
        :, :out_feats].set(params['bfc'])

    xp2, a_srcT2, a_dst2, b2, f2 = projections(
        h1, params['w2'], params['as2'], params['ad2'], params['b2'], hf2_pad)
    out_pad = _gat_layer_call(a_dst2, adjw, a_srcT2, xp2, params['ce2'], b2,
                              tm=tm, tk=tk, f_out=f2, vmem_bytes=vmem,
                              fc=(wfc_pad, bfc_pad))
    return out_pad[:N, :out_feats]


def init_params(key, in_feats, out_feats):
    H = NUM_HEADS
    outs = [in_feats, in_feats]
    ins = [in_feats, in_feats * H]
    ks = jax.random.split(key, 16)
    p = {}

    def glorot(k, shape):
        return jax.random.normal(k, shape, jnp.float32) * 0.1

    # layer 1
    p['w1'] = glorot(ks[0], (ins[0], H * outs[0]))        # shared lin weight^T
    p['as1'] = glorot(ks[1], (H, outs[0]))                # att_src
    p['ad1'] = glorot(ks[2], (H, outs[0]))                # att_dst
    we1 = glorot(ks[3], (H, outs[0]))                     # lin_edge weight (edge_dim=1)
    ae1 = glorot(ks[4], (H, outs[0]))                     # att_edge
    p['ce1'] = jnp.sum(we1 * ae1, axis=-1)                # (H,) edge coeff per head
    p['b1'] = glorot(ks[5], (1, H * outs[0]))             # bias (concat=True)
    # layer 2
    p['w2'] = glorot(ks[6], (ins[1], H * outs[1]))
    p['as2'] = glorot(ks[7], (H, outs[1]))
    p['ad2'] = glorot(ks[8], (H, outs[1]))
    we2 = glorot(ks[9], (H, outs[1]))
    ae2 = glorot(ks[10], (H, outs[1]))
    p['ce2'] = jnp.sum(we2 * ae2, axis=-1)
    p['b2'] = glorot(ks[11], (1, H * outs[1]))
    # fc
    p['wfc'] = glorot(ks[12], (outs[1] * H, out_feats))
    p['bfc'] = glorot(ks[13], (1, out_feats))
    return p


if __name__ == "__main__":
    key = jax.random.PRNGKey(0)
    in_feats, out_feats = 8, 4
    N, E = 16, 40

    k_x, k_src, k_dst, k_w, k_p = jax.random.split(key, 5)
    x = jax.random.normal(k_x, (N, in_feats), jnp.float32)
    src = jax.random.randint(k_src, (E,), 0, N)
    dst = jax.random.randint(k_dst, (E,), 0, N)
    dst = jnp.where(dst == src, (dst + 1) % N, dst)       # no self loops in input
    edge_index = jnp.stack([src, dst], axis=0)            # [2, E]
    edge_weight = jax.random.uniform(k_w, (E,), jnp.float32)

    params = init_params(k_p, in_feats, out_feats)

    fwd = jax.jit(gat_net_forward)
    out = fwd(x, edge_index, edge_weight, params)
    jax.block_until_ready(out)
    assert out.shape == (N, out_feats)
    assert bool(jnp.all(jnp.isfinite(out)))
    print("KERNEL_OK")
</pallas_src>

<mosaic_0001>
module attributes {stable_mosaic.version = 11 : i64} {
  func.func private @main(%arg0: i32) attributes {dimension_semantics = [#tpu.dimension_semantics<core_parallel>], iteration_bounds = array<i64: 2>, tpu.core_type = #tpu.core_type<sc_scalar_subcore>, window_params = []} {
    return
  }
}

module attributes {stable_mosaic.version = 11 : i64} {
  func.func private @main(%arg0: i32) attributes {dimension_semantics = [#tpu.dimension_semantics<core_parallel>], iteration_bounds = array<i64: 2>, tpu.core_type = #tpu.core_type<sc_scalar_subcore>, window_params = []} {
    return
  }
}

module attributes {stable_mosaic.version = 11 : i64} {
  func.func @gat_layer_kernel(%arg0: i32, %arg1: i32, %arg2: memref<16x2xf32, #tpu.memory_space<vmem>>, %arg3: memref<16x128xbf16, #tpu.memory_space<vmem>>, %arg4: memref<2x128xf32, #tpu.memory_space<vmem>>, %arg5: memref<128x128xf32, #tpu.memory_space<vmem>>, %arg6: memref<2xf32, #tpu.memory_space<smem>>, %arg7: memref<1x128xf32, #tpu.memory_space<vmem>>, %arg8: memref<16x128xf32, #tpu.memory_space<vmem>>, %arg9: memref<2x16x1xf32, #tpu.memory_space<vmem>>, %arg10: memref<2x16x1xf32, #tpu.memory_space<vmem>>, %arg11: memref<16x128xf32, #tpu.memory_space<vmem>>) attributes {dimension_semantics = [#tpu.dimension_semantics<parallel>, #tpu.dimension_semantics<arbitrary>], iteration_bounds = array<i64: 1, 1>, scalar_prefetch = 0 : i64, scratch_operands = 3 : i64, tpu.core_type = #tpu.core_type<tc>, window_params = [{transform_indices = @transform_0, window_bounds = array<i64: 16, 2>}, {transform_indices = @transform_1, window_bounds = array<i64: 16, 128>}, {transform_indices = @transform_2, window_bounds = array<i64: 2, 128>}, {transform_indices = @transform_3, window_bounds = array<i64: 128, 128>}, {transform_indices = @transform_4, window_bounds = array<i64: 2>}, {pipeline_mode = #tpu.pipeline_mode<synchronous>, transform_indices = @transform_5, window_bounds = array<i64: 1, 128>}, {transform_indices = @transform_6, window_bounds = array<i64: 16, 128>}]} {
    %c0_i32 = arith.constant 0 : i32
    %0 = arith.cmpi eq, %arg1, %c0_i32 : i32
    %1 = arith.extui %0 : i1 to i32
    %c0_i32_0 = arith.constant 0 : i32
    %2 = arith.cmpi ne, %1, %c0_i32_0 : i32
    scf.if %2 {
      %cst_58 = arith.constant 0xFF800000 : f32
      %130 = vector.broadcast %cst_58 : f32 to vector<2x16x1xf32>
      %c0_59 = arith.constant 0 : index
      %c0_60 = arith.constant 0 : index
      %c0_61 = arith.constant 0 : index
      %131 = vector.load %arg9[%c0_59, %c0_60, %c0_61] : memref<2x16x1xf32, #tpu.memory_space<vmem>>, vector<2x16x1xf32>
      tpu.vector_store %arg9[%c0_59, %c0_60, %c0_61], %130 {strides = array<i32>} : memref<2x16x1xf32, #tpu.memory_space<vmem>>, vector<2x16x1xf32>,
      %cst_62 = arith.constant 0.000000e+00 : f32
      %132 = vector.broadcast %cst_62 : f32 to vector<2x16x1xf32>
      %c0_63 = arith.constant 0 : index
      %c0_64 = arith.constant 0 : index
      %c0_65 = arith.constant 0 : index
      %133 = vector.load %arg10[%c0_63, %c0_64, %c0_65] : memref<2x16x1xf32, #tpu.memory_space<vmem>>, vector<2x16x1xf32>
      tpu.vector_store %arg10[%c0_63, %c0_64, %c0_65], %132 {strides = array<i32>} : memref<2x16x1xf32, #tpu.memory_space<vmem>>, vector<2x16x1xf32>,
      %cst_66 = arith.constant 0.000000e+00 : f32
      %134 = vector.broadcast %cst_66 : f32 to vector<16x128xf32>
      %c0_67 = arith.constant 0 : index
      %c0_68 = arith.constant 0 : index
      %135 = vector.load %arg11[%c0_67, %c0_68] : memref<16x128xf32, #tpu.memory_space<vmem>>, vector<16x128xf32>
      tpu.vector_store %arg11[%c0_67, %c0_68], %134 {strides = array<i32>} : memref<16x128xf32, #tpu.memory_space<vmem>>, vector<16x128xf32>,
    } else {
    }
    %c0 = arith.constant 0 : index
    %c0_1 = arith.constant 0 : index
    %3 = vector.load %arg3[%c0, %c0_1] : memref<16x128xbf16, #tpu.memory_space<vmem>>, vector<16x128xbf16>
    %4 = arith.extf %3 : vector<16x128xbf16> to vector<16x128xf32>
    %5 = arith.cmpf one, %4, %4 : vector<16x128xf32>
    %cst = arith.constant dense<true> : vector<16x128xi1>
    %6 = arith.xori %5, %cst : vector<16x128xi1>
    %cst_2 = arith.constant 0.000000e+00 : f32
    %7 = vector.broadcast %cst_2 : f32 to vector<16x128xf32>
    %8 = arith.select %6, %4, %7 : vector<16x128xi1>, vector<16x128xf32>
    %c0_3 = arith.constant 0 : index
    %c0_4 = arith.constant 0 : index
    %9 = vector.load %arg2[%c0_3, %c0_4] : memref<16x2xf32, #tpu.memory_space<vmem>>, vector<16x2xf32>
    %c0_5 = arith.constant 0 : index
    %c0_6 = arith.constant 0 : index
    %10 = vector.load %arg4[%c0_5, %c0_6] : memref<2x128xf32, #tpu.memory_space<vmem>>, vector<2x128xf32>
    %c0_7 = arith.constant 0 : index
    %c0_8 = arith.constant 0 : index
    %11 = vector.load %arg5[%c0_7, %c0_8] : memref<128x128xf32, #tpu.memory_space<vmem>>, vector<128x128xf32>
    %12 = tpu.iota {dimensions = array<i32: 1>} : vector<1x128xi32>
    %cst_9 = arith.constant 1.000000e+00 : f32
    %13 = vector.broadcast %cst_9 : f32 to vector<16x128xf32>
    %cst_10 = arith.constant 0.000000e+00 : f32
    %14 = vector.broadcast %cst_10 : f32 to vector<16x128xf32>
    %15 = vector.extract_strided_slice %9 {offsets = [0, 0], sizes = [16, 1], strides = [1, 1]} : vector<16x2xf32> to vector<16x1xf32>
    %16 = vector.extract_strided_slice %10 {offsets = [0, 0], sizes = [1, 128], strides = [1, 1]} : vector<2x128xf32> to vector<1x128xf32>
    %17 = vector.broadcast %15 : vector<16x1xf32> to vector<16x128xf32>
    %18 = vector.broadcast %16 : vector<1x128xf32> to vector<16x128xf32>
    %19 = arith.addf %17, %18 : vector<16x128xf32>
    %c0_11 = arith.constant 0 : index
    %20 = memref.load %arg6[%c0_11] : memref<2xf32, #tpu.memory_space<smem>>
    %21 = vector.broadcast %20 : f32 to vector<16x128xf32>
    %22 = arith.mulf %8, %21 : vector<16x128xf32>
    %23 = arith.addf %19, %22 : vector<16x128xf32>
    %cst_12 = arith.constant 0.000000e+00 : f32
    %24 = vector.broadcast %cst_12 : f32 to vector<16x128xf32>
    %25 = arith.cmpf ogt, %23, %24 : vector<16x128xf32>
    %cst_13 = arith.constant 2.000000e-01 : f32
    %26 = vector.broadcast %cst_13 : f32 to vector<16x128xf32>
    %27 = arith.mulf %26, %23 : vector<16x128xf32>
    %28 = arith.select %25, %23, %27 : vector<16x128xi1>, vector<16x128xf32>
    %cst_14 = arith.constant -1.000000e+30 : f32
    %29 = vector.broadcast %cst_14 : f32 to vector<16x128xf32>
    %30 = arith.select %6, %28, %29 : vector<16x128xi1>, vector<16x128xf32>
    %c0_15 = arith.constant 0 : index
    %c0_16 = arith.constant 0 : index
    %c0_17 = arith.constant 0 : index
    %31 = vector.load %arg9[%c0_15, %c0_16, %c0_17] : memref<2x16x1xf32, #tpu.memory_space<vmem>>, vector<1x16x1xf32>
    %32 = vector.shape_cast %31 : vector<1x16x1xf32> to vector<16x1xf32>
    %cst_18 = arith.constant dense<0xFF800000> : vector<16xf32>
    %33 = vector.multi_reduction <maximumf>, %30, %cst_18 [1] : vector<16x128xf32> to vector<16xf32>
    %34 = vector.shape_cast %33 : vector<16xf32> to vector<16x1xf32>
    %35 = arith.maximumf %32, %34 : vector<16x1xf32>
    %36 = arith.subf %32, %35 : vector<16x1xf32>
    %37 = math.exp %36 : vector<16x1xf32>
    %38 = vector.broadcast %35 : vector<16x1xf32> to vector<16x128xf32>
    %39 = arith.subf %30, %38 : vector<16x128xf32>
    %40 = math.exp %39 : vector<16x128xf32>
    %c0_19 = arith.constant 0 : index
    %c0_20 = arith.constant 0 : index
    %c0_21 = arith.constant 0 : index
    %41 = vector.load %arg10[%c0_19, %c0_20, %c0_21] : memref<2x16x1xf32, #tpu.memory_space<vmem>>, vector<1x16x1xf32>
    %42 = vector.shape_cast %41 : vector<1x16x1xf32> to vector<16x1xf32>
    %43 = arith.mulf %37, %42 : vector<16x1xf32>
    %cst_22 = arith.constant dense<0.000000e+00> : vector<16xf32>
    %44 = vector.multi_reduction <add>, %40, %cst_22 [1] : vector<16x128xf32> to vector<16xf32>
    %45 = vector.shape_cast %44 : vector<16xf32> to vector<16x1xf32>
    %46 = arith.addf %43, %45 : vector<16x1xf32>
    %c0_23 = arith.constant 0 : index
    %c0_24 = arith.constant 0 : index
    %c0_25 = arith.constant 0 : index
    %47 = vector.load %arg10[%c0_23, %c0_24, %c0_25] : memref<2x16x1xf32, #tpu.memory_space<vmem>>, vector<1x16x1xf32>
    %48 = vector.shape_cast %47 : vector<1x16x1xf32> to vector<16x1xf32>
    %49 = vector.shape_cast %46 : vector<16x1xf32> to vector<1x16x1xf32>
    tpu.vector_store %arg10[%c0_23, %c0_24, %c0_25], %49 {strides = array<i32>} : memref<2x16x1xf32, #tpu.memory_space<vmem>>, vector<1x16x1xf32>,
    %c0_26 = arith.constant 0 : index
    %c0_27 = arith.constant 0 : index
    %c0_28 = arith.constant 0 : index
    %50 = vector.load %arg9[%c0_26, %c0_27, %c0_28] : memref<2x16x1xf32, #tpu.memory_space<vmem>>, vector<1x16x1xf32>
    %51 = vector.shape_cast %50 : vector<1x16x1xf32> to vector<16x1xf32>
    %52 = vector.shape_cast %35 : vector<16x1xf32> to vector<1x16x1xf32>
    tpu.vector_store %arg9[%c0_26, %c0_27, %c0_28], %52 {strides = array<i32>} : memref<2x16x1xf32, #tpu.memory_space<vmem>>, vector<1x16x1xf32>,
    %c0_i32_29 = arith.constant 0 : i32
    %53 = vector.broadcast %c0_i32_29 : i32 to vector<1x128xi32>
    %54 = arith.cmpi sge, %12, %53 : vector<1x128xi32>
    %c8_i32 = arith.constant 8 : i32
    %55 = vector.broadcast %c8_i32 : i32 to vector<1x128xi32>
    %56 = arith.cmpi slt, %12, %55 : vector<1x128xi32>
    %57 = arith.andi %54, %56 : vector<1x128xi1>
    %cst_30 = arith.constant 0.000000e+00 : f32
    %58 = vector.shape_cast %57 : vector<1x128xi1> to vector<1x128xi1>
    %59 = vector.broadcast %58 : vector<1x128xi1> to vector<128x128xi1>
    %60 = vector.broadcast %cst_30 : f32 to vector<128x128xf32>
    %61 = arith.select %59, %11, %60 : vector<128x128xi1>, vector<128x128xf32>
    %62 = vector.shape_cast %57 : vector<1x128xi1> to vector<1x128xi1>
    %63 = vector.broadcast %62 : vector<1x128xi1> to vector<16x128xi1>
    %64 = vector.shape_cast %37 : vector<16x1xf32> to vector<16x1xf32>
    %65 = vector.broadcast %64 : vector<16x1xf32> to vector<16x128xf32>
    %66 = arith.select %63, %65, %13 : vector<16x128xi1>, vector<16x128xf32>
    %cst_31 = arith.constant dense<0.000000e+00> : vector<16x128xf32>
    %67 = tpu.matmul %40, %61, %cst_31 {dimension_numbers = #tpu.dot_dimension_numbers<[1], [0], [0], [1], [0, 0, 1, 1], [], []>} : vector<16x128xf32>, vector<128x128xf32>, vector<16x128xf32> -> vector<16x128xf32>
    %68 = arith.addf %14, %67 : vector<16x128xf32>
    %69 = vector.extract_strided_slice %9 {offsets = [0, 1], sizes = [16, 1], strides = [1, 1]} : vector<16x2xf32> to vector<16x1xf32>
    %70 = vector.extract_strided_slice %10 {offsets = [1, 0], sizes = [1, 128], strides = [1, 1]} : vector<2x128xf32> to vector<1x128xf32>
    %71 = vector.broadcast %69 : vector<16x1xf32> to vector<16x128xf32>
    %72 = vector.broadcast %70 : vector<1x128xf32> to vector<16x128xf32>
    %73 = arith.addf %71, %72 : vector<16x128xf32>
    %c1 = arith.constant 1 : index
    %74 = memref.load %arg6[%c1] : memref<2xf32, #tpu.memory_space<smem>>
    %75 = vector.broadcast %74 : f32 to vector<16x128xf32>
    %76 = arith.mulf %8, %75 : vector<16x128xf32>
    %77 = arith.addf %73, %76 : vector<16x128xf32>
    %cst_32 = arith.constant 0.000000e+00 : f32
    %78 = vector.broadcast %cst_32 : f32 to vector<16x128xf32>
    %79 = arith.cmpf ogt, %77, %78 : vector<16x128xf32>
    %cst_33 = arith.constant 2.000000e-01 : f32
    %80 = vector.broadcast %cst_33 : f32 to vector<16x128xf32>
    %81 = arith.mulf %80, %77 : vector<16x128xf32>
    %82 = arith.select %79, %77, %81 : vector<16x128xi1>, vector<16x128xf32>
    %cst_34 = arith.constant -1.000000e+30 : f32
    %83 = vector.broadcast %cst_34 : f32 to vector<16x128xf32>
    %84 = arith.select %6, %82, %83 : vector<16x128xi1>, vector<16x128xf32>
    %c1_35 = arith.constant 1 : index
    %c0_36 = arith.constant 0 : index
    %c0_37 = arith.constant 0 : index
    %85 = vector.load %arg9[%c1_35, %c0_36, %c0_37] : memref<2x16x1xf32, #tpu.memory_space<vmem>>, vector<1x16x1xf32>
    %86 = vector.shape_cast %85 : vector<1x16x1xf32> to vector<16x1xf32>
    %cst_38 = arith.constant dense<0xFF800000> : vector<16xf32>
    %87 = vector.multi_reduction <maximumf>, %84, %cst_38 [1] : vector<16x128xf32> to vector<16xf32>
    %88 = vector.shape_cast %87 : vector<16xf32> to vector<16x1xf32>
    %89 = arith.maximumf %86, %88 : vector<16x1xf32>
    %90 = arith.subf %86, %89 : vector<16x1xf32>
    %91 = math.exp %90 : vector<16x1xf32>
    %92 = vector.broadcast %89 : vector<16x1xf32> to vector<16x128xf32>
    %93 = arith.subf %84, %92 : vector<16x128xf32>
    %94 = math.exp %93 : vector<16x128xf32>
    %c1_39 = arith.constant 1 : index
    %c0_40 = arith.constant 0 : index
    %c0_41 = arith.constant 0 : index
    %95 = vector.load %arg10[%c1_39, %c0_40, %c0_41] : memref<2x16x1xf32, #tpu.memory_space<vmem>>, vector<1x16x1xf32>
    %96 = vector.shape_cast %95 : vector<1x16x1xf32> to vector<16x1xf32>
    %97 = arith.mulf %91, %96 : vector<16x1xf32>
    %cst_42 = arith.constant dense<0.000000e+00> : vector<16xf32>
    %98 = vector.multi_reduction <add>, %94, %cst_42 [1] : vector<16x128xf32> to vector<16xf32>
    %99 = vector.shape_cast %98 : vector<16xf32> to vector<16x1xf32>
    %100 = arith.addf %97, %99 : vector<16x1xf32>
    %c1_43 = arith.constant 1 : index
    %c0_44 = arith.constant 0 : index
    %c0_45 = arith.constant 0 : index
    %101 = vector.load %arg10[%c1_43, %c0_44, %c0_45] : memref<2x16x1xf32, #tpu.memory_space<vmem>>, vector<1x16x1xf32>
    %102 = vector.shape_cast %101 : vector<1x16x1xf32> to vector<16x1xf32>
    %103 = vector.shape_cast %100 : vector<16x1xf32> to vector<1x16x1xf32>
    tpu.vector_store %arg10[%c1_43, %c0_44, %c0_45], %103 {strides = array<i32>} : memref<2x16x1xf32, #tpu.memory_space<vmem>>, vector<1x16x1xf32>,
    %c1_46 = arith.constant 1 : index
    %c0_47 = arith.constant 0 : index
    %c0_48 = arith.constant 0 : index
    %104 = vector.load %arg9[%c1_46, %c0_47, %c0_48] : memref<2x16x1xf32, #tpu.memory_space<vmem>>, vector<1x16x1xf32>
    %105 = vector.shape_cast %104 : vector<1x16x1xf32> to vector<16x1xf32>
    %106 = vector.shape_cast %89 : vector<16x1xf32> to vector<1x16x1xf32>
    tpu.vector_store %arg9[%c1_46, %c0_47, %c0_48], %106 {strides = array<i32>} : memref<2x16x1xf32, #tpu.memory_space<vmem>>, vector<1x16x1xf32>,
    %c8_i32_49 = arith.constant 8 : i32
    %107 = vector.broadcast %c8_i32_49 : i32 to vector<1x128xi32>
    %108 = arith.cmpi sge, %12, %107 : vector<1x128xi32>
    %c16_i32 = arith.constant 16 : i32
    %109 = vector.broadcast %c16_i32 : i32 to vector<1x128xi32>
    %110 = arith.cmpi slt, %12, %109 : vector<1x128xi32>
    %111 = arith.andi %108, %110 : vector<1x128xi1>
    %cst_50 = arith.constant 0.000000e+00 : f32
    %112 = vector.shape_cast %111 : vector<1x128xi1> to vector<1x128xi1>
    %113 = vector.broadcast %112 : vector<1x128xi1> to vector<128x128xi1>
    %114 = vector.broadcast %cst_50 : f32 to vector<128x128xf32>
    %115 = arith.select %113, %11, %114 : vector<128x128xi1>, vector<128x128xf32>
    %116 = vector.shape_cast %111 : vector<1x128xi1> to vector<1x128xi1>
    %117 = vector.broadcast %116 : vector<1x128xi1> to vector<16x128xi1>
    %118 = vector.shape_cast %91 : vector<16x1xf32> to vector<16x1xf32>
    %119 = vector.broadcast %118 : vector<16x1xf32> to vector<16x128xf32>
    %120 = arith.select %117, %119, %66 : vector<16x128xi1>, vector<16x128xf32>
    %cst_51 = arith.constant dense<0.000000e+00> : vector<16x128xf32>
    %121 = tpu.matmul %94, %115, %cst_51 {dimension_numbers = #tpu.dot_dimension_numbers<[1], [0], [0], [1], [0, 0, 1, 1], [], []>} : vector<16x128xf32>, vector<128x128xf32>, vector<16x128xf32> -> vector<16x128xf32>
    %122 = arith.addf %68, %121 : vector<16x128xf32>
    %c0_52 = arith.constant 0 : index
    %c0_53 = arith.constant 0 : index
    %123 = vector.load %arg11[%c0_52, %c0_53] : memref<16x128xf32, #tpu.memory_space<vmem>>, vector<16x128xf32>
    %124 = arith.mulf %123, %120 : vector<16x128xf32>
    %125 = arith.addf %124, %122 : vector<16x128xf32>
    %c0_54 = arith.constant 0 : index
    %c0_55 = arith.constant 0 : index
    %126 = vector.load %arg11[%c0_54, %c0_55] : memref<16x128xf32, #tpu.memory_space<vmem>>, vector<16x128xf32>
    tpu.vector_store %arg11[%c0_54, %c0_55], %125 {strides = array<i32>} : memref<16x128xf32, #tpu.memory_space<vmem>>, vector<16x128xf32>,
    %c0_i32_56 = arith.constant 0 : i32
    %127 = arith.cmpi eq, %arg1, %c0_i32_56 : i32
    %128 = arith.extui %127 : i1 to i32
    %c0_i32_57 = arith.constant 0 : i32
    %129 = arith.cmpi ne, %128, %c0_i32_57 : i32
    scf.if %129 {
      %130 = tpu.iota {dimensions = array<i32: 1>} : vector<1x128xi32>
      %cst_58 = arith.constant 1.000000e+00 : f32
      %131 = vector.broadcast %cst_58 : f32 to vector<16x128xf32>
      %c0_i32_59 = arith.constant 0 : i32
      %132 = vector.broadcast %c0_i32_59 : i32 to vector<1x128xi32>
      %133 = arith.cmpi sge, %130, %132 : vector<1x128xi32>
      %c8_i32_60 = arith.constant 8 : i32
      %134 = vector.broadcast %c8_i32_60 : i32 to vector<1x128xi32>
      %135 = arith.cmpi slt, %130, %134 : vector<1x128xi32>
      %136 = arith.andi %133, %135 : vector<1x128xi1>
      %c0_61 = arith.constant 0 : index
      %c0_62 = arith.constant 0 : index
      %c0_63 = arith.constant 0 : index
      %137 = vector.load %arg10[%c0_61, %c0_62, %c0_63] : memref<2x16x1xf32, #tpu.memory_space<vmem>>, vector<1x16x1xf32>
      %138 = vector.shape_cast %137 : vector<1x16x1xf32> to vector<16x1xf32>
      %139 = tpu.reciprocal %138 {approx = true} : vector<16x1xf32> -> vector<16x1xf32>
      %140 = vector.shape_cast %136 : vector<1x128xi1> to vector<1x128xi1>
      %141 = vector.broadcast %140 : vector<1x128xi1> to vector<16x128xi1>
      %142 = vector.shape_cast %139 : vector<16x1xf32> to vector<16x1xf32>
      %143 = vector.broadcast %142 : vector<16x1xf32> to vector<16x128xf32>
      %144 = arith.select %141, %143, %131 : vector<16x128xi1>, vector<16x128xf32>
      %c8_i32_64 = arith.constant 8 : i32
      %145 = vector.broadcast %c8_i32_64 : i32 to vector<1x128xi32>
      %146 = arith.cmpi sge, %130, %145 : vector<1x128xi32>
      %c16_i32_65 = arith.constant 16 : i32
      %147 = vector.broadcast %c16_i32_65 : i32 to vector<1x128xi32>
      %148 = arith.cmpi slt, %130, %147 : vector<1x128xi32>
      %149 = arith.andi %146, %148 : vector<1x128xi1>
      %c1_66 = arith.constant 1 : index
      %c0_67 = arith.constant 0 : index
      %c0_68 = arith.constant 0 : index
      %150 = vector.load %arg10[%c1_66, %c0_67, %c0_68] : memref<2x16x1xf32, #tpu.memory_space<vmem>>, vector<1x16x1xf32>
      %151 = vector.shape_cast %150 : vector<1x16x1xf32> to vector<16x1xf32>
      %152 = tpu.reciprocal %151 {approx = true} : vector<16x1xf32> -> vector<16x1xf32>
      %153 = vector.shape_cast %149 : vector<1x128xi1> to vector<1x128xi1>
      %154 = vector.broadcast %153 : vector<1x128xi1> to vector<16x128xi1>
      %155 = vector.shape_cast %152 : vector<16x1xf32> to vector<16x1xf32>
      %156 = vector.broadcast %155 : vector<16x1xf32> to vector<16x128xf32>
      %157 = arith.select %154, %156, %144 : vector<16x128xi1>, vector<16x128xf32>
      %c0_69 = arith.constant 0 : index
      %c0_70 = arith.constant 0 : index
      %158 = vector.load %arg11[%c0_69, %c0_70] : memref<16x128xf32, #tpu.memory_space<vmem>>, vector<16x128xf32>
      %159 = arith.mulf %158, %157 : vector<16x128xf32>
      %c0_71 = arith.constant 0 : index
      %c0_72 = arith.constant 0 : index
      %160 = vector.load %arg7[%c0_71, %c0_72] : memref<1x128xf32, #tpu.memory_space<vmem>>, vector<1x128xf32>
      %161 = vector.broadcast %160 : vector<1x128xf32> to vector<16x128xf32>
      %162 = arith.addf %159, %161 : vector<16x128xf32>
      %cst_73 = arith.constant 0.000000e+00 : f32
      %163 = vector.broadcast %cst_73 : f32 to vector<16x128xf32>
      %164 = arith.maximumf %162, %163 : vector<16x128xf32>
      %c0_74 = arith.constant 0 : index
      %c0_75 = arith.constant 0 : index
      %165 = vector.load %arg8[%c0_74, %c0_75] : memref<16x128xf32, #tpu.memory_space<vmem>>, vector<16x128xf32>
      tpu.vector_store %arg8[%c0_74, %c0_75], %164 {strides = array<i32>} : memref<16x128xf32, #tpu.memory_space<vmem>>, vector<16x128xf32>,
    } else {
    }
    return
  }
  func.func @transform_0(%arg0: i32, %arg1: i32) -> (i32, i32) {
    %c0_i32 = arith.constant 0 : i32
    %c0_i32_0 = arith.constant 0 : i32
    return %arg0, %c0_i32 : i32, i32
  }
  func.func @transform_1(%arg0: i32, %arg1: i32) -> (i32, i32) {
    %c0_i32 = arith.constant 0 : i32
    return %arg0, %arg1 : i32, i32
  }
  func.func @transform_2(%arg0: i32, %arg1: i32) -> (i32, i32) {
    %c0_i32 = arith.constant 0 : i32
    %c0_i32_0 = arith.constant 0 : i32
    return %c0_i32, %arg1 : i32, i32
  }
  func.func @transform_3(%arg0: i32, %arg1: i32) -> (i32, i32) {
    %c0_i32 = arith.constant 0 : i32
    %c0_i32_0 = arith.constant 0 : i32
    return %arg1, %c0_i32 : i32, i32
  }
  func.func @transform_4(%arg0: i32, %arg1: i32) -> i32 {
    %c0_i32 = arith.constant 0 : i32
    %c0_i32_0 = arith.constant 0 : i32
    return %c0_i32 : i32
  }
  func.func @transform_5(%arg0: i32, %arg1: i32) -> (i32, i32) {
    %c0_i32 = arith.constant 0 : i32
    %c0_i32_0 = arith.constant 0 : i32
    %c0_i32_1 = arith.constant 0 : i32
    return %c0_i32, %c0_i32_0 : i32, i32
  }
  func.func @transform_6(%arg0: i32, %arg1: i32) -> (i32, i32) {
    %c0_i32 = arith.constant 0 : i32
    %c0_i32_0 = arith.constant 0 : i32
    return %arg0, %c0_i32 : i32, i32
  }
}

module attributes {stable_mosaic.version = 11 : i64} {
  func.func @gat_layer_fc_kernel(%arg0: i32, %arg1: i32, %arg2: memref<16x2xf32, #tpu.memory_space<vmem>>, %arg3: memref<16x128xbf16, #tpu.memory_space<vmem>>, %arg4: memref<2x128xf32, #tpu.memory_space<vmem>>, %arg5: memref<128x128xf32, #tpu.memory_space<vmem>>, %arg6: memref<2xf32, #tpu.memory_space<smem>>, %arg7: memref<1x128xf32, #tpu.memory_space<vmem>>, %arg8: memref<128x128xf32, #tpu.memory_space<vmem>>, %arg9: memref<1x128xf32, #tpu.memory_space<vmem>>, %arg10: memref<16x128xf32, #tpu.memory_space<vmem>>, %arg11: memref<2x16x1xf32, #tpu.memory_space<vmem>>, %arg12: memref<2x16x1xf32, #tpu.memory_space<vmem>>, %arg13: memref<16x128xf32, #tpu.memory_space<vmem>>) attributes {dimension_semantics = [#tpu.dimension_semantics<parallel>, #tpu.dimension_semantics<arbitrary>], iteration_bounds = array<i64: 1, 1>, scalar_prefetch = 0 : i64, scratch_operands = 3 : i64, tpu.core_type = #tpu.core_type<tc>, window_params = [{transform_indices = @transform_0, window_bounds = array<i64: 16, 2>}, {transform_indices = @transform_1, window_bounds = array<i64: 16, 128>}, {transform_indices = @transform_2, window_bounds = array<i64: 2, 128>}, {transform_indices = @transform_3, window_bounds = array<i64: 128, 128>}, {transform_indices = @transform_4, window_bounds = array<i64: 2>}, {pipeline_mode = #tpu.pipeline_mode<synchronous>, transform_indices = @transform_5, window_bounds = array<i64: 1, 128>}, {pipeline_mode = #tpu.pipeline_mode<synchronous>, transform_indices = @transform_6, window_bounds = array<i64: 128, 128>}, {pipeline_mode = #tpu.pipeline_mode<synchronous>, transform_indices = @transform_7, window_bounds = array<i64: 1, 128>}, {transform_indices = @transform_8, window_bounds = array<i64: 16, 128>}]} {
    %c0_i32 = arith.constant 0 : i32
    %0 = arith.cmpi eq, %arg1, %c0_i32 : i32
    %1 = arith.extui %0 : i1 to i32
    %c0_i32_0 = arith.constant 0 : i32
    %2 = arith.cmpi ne, %1, %c0_i32_0 : i32
    scf.if %2 {
      %cst_58 = arith.constant 0xFF800000 : f32
      %130 = vector.broadcast %cst_58 : f32 to vector<2x16x1xf32>
      %c0_59 = arith.constant 0 : index
      %c0_60 = arith.constant 0 : index
      %c0_61 = arith.constant 0 : index
      %131 = vector.load %arg11[%c0_59, %c0_60, %c0_61] : memref<2x16x1xf32, #tpu.memory_space<vmem>>, vector<2x16x1xf32>
      tpu.vector_store %arg11[%c0_59, %c0_60, %c0_61], %130 {strides = array<i32>} : memref<2x16x1xf32, #tpu.memory_space<vmem>>, vector<2x16x1xf32>,
      %cst_62 = arith.constant 0.000000e+00 : f32
      %132 = vector.broadcast %cst_62 : f32 to vector<2x16x1xf32>
      %c0_63 = arith.constant 0 : index
      %c0_64 = arith.constant 0 : index
      %c0_65 = arith.constant 0 : index
      %133 = vector.load %arg12[%c0_63, %c0_64, %c0_65] : memref<2x16x1xf32, #tpu.memory_space<vmem>>, vector<2x16x1xf32>
      tpu.vector_store %arg12[%c0_63, %c0_64, %c0_65], %132 {strides = array<i32>} : memref<2x16x1xf32, #tpu.memory_space<vmem>>, vector<2x16x1xf32>,
      %cst_66 = arith.constant 0.000000e+00 : f32
      %134 = vector.broadcast %cst_66 : f32 to vector<16x128xf32>
      %c0_67 = arith.constant 0 : index
      %c0_68 = arith.constant 0 : index
      %135 = vector.load %arg13[%c0_67, %c0_68] : memref<16x128xf32, #tpu.memory_space<vmem>>, vector<16x128xf32>
      tpu.vector_store %arg13[%c0_67, %c0_68], %134 {strides = array<i32>} : memref<16x128xf32, #tpu.memory_space<vmem>>, vector<16x128xf32>,
    } else {
    }
    %c0 = arith.constant 0 : index
    %c0_1 = arith.constant 0 : index
    %3 = vector.load %arg3[%c0, %c0_1] : memref<16x128xbf16, #tpu.memory_space<vmem>>, vector<16x128xbf16>
    %4 = arith.extf %3 : vector<16x128xbf16> to vector<16x128xf32>
    %5 = arith.cmpf one, %4, %4 : vector<16x128xf32>
    %cst = arith.constant dense<true> : vector<16x128xi1>
    %6 = arith.xori %5, %cst : vector<16x128xi1>
    %cst_2 = arith.constant 0.000000e+00 : f32
    %7 = vector.broadcast %cst_2 : f32 to vector<16x128xf32>
    %8 = arith.select %6, %4, %7 : vector<16x128xi1>, vector<16x128xf32>
    %c0_3 = arith.constant 0 : index
    %c0_4 = arith.constant 0 : index
    %9 = vector.load %arg2[%c0_3, %c0_4] : memref<16x2xf32, #tpu.memory_space<vmem>>, vector<16x2xf32>
    %c0_5 = arith.constant 0 : index
    %c0_6 = arith.constant 0 : index
    %10 = vector.load %arg4[%c0_5, %c0_6] : memref<2x128xf32, #tpu.memory_space<vmem>>, vector<2x128xf32>
    %c0_7 = arith.constant 0 : index
    %c0_8 = arith.constant 0 : index
    %11 = vector.load %arg5[%c0_7, %c0_8] : memref<128x128xf32, #tpu.memory_space<vmem>>, vector<128x128xf32>
    %12 = tpu.iota {dimensions = array<i32: 1>} : vector<1x128xi32>
    %cst_9 = arith.constant 1.000000e+00 : f32
    %13 = vector.broadcast %cst_9 : f32 to vector<16x128xf32>
    %cst_10 = arith.constant 0.000000e+00 : f32
    %14 = vector.broadcast %cst_10 : f32 to vector<16x128xf32>
    %15 = vector.extract_strided_slice %9 {offsets = [0, 0], sizes = [16, 1], strides = [1, 1]} : vector<16x2xf32> to vector<16x1xf32>
    %16 = vector.extract_strided_slice %10 {offsets = [0, 0], sizes = [1, 128], strides = [1, 1]} : vector<2x128xf32> to vector<1x128xf32>
    %17 = vector.broadcast %15 : vector<16x1xf32> to vector<16x128xf32>
    %18 = vector.broadcast %16 : vector<1x128xf32> to vector<16x128xf32>
    %19 = arith.addf %17, %18 : vector<16x128xf32>
    %c0_11 = arith.constant 0 : index
    %20 = memref.load %arg6[%c0_11] : memref<2xf32, #tpu.memory_space<smem>>
    %21 = vector.broadcast %20 : f32 to vector<16x128xf32>
    %22 = arith.mulf %8, %21 : vector<16x128xf32>
    %23 = arith.addf %19, %22 : vector<16x128xf32>
    %cst_12 = arith.constant 0.000000e+00 : f32
    %24 = vector.broadcast %cst_12 : f32 to vector<16x128xf32>
    %25 = arith.cmpf ogt, %23, %24 : vector<16x128xf32>
    %cst_13 = arith.constant 2.000000e-01 : f32
    %26 = vector.broadcast %cst_13 : f32 to vector<16x128xf32>
    %27 = arith.mulf %26, %23 : vector<16x128xf32>
    %28 = arith.select %25, %23, %27 : vector<16x128xi1>, vector<16x128xf32>
    %cst_14 = arith.constant -1.000000e+30 : f32
    %29 = vector.broadcast %cst_14 : f32 to vector<16x128xf32>
    %30 = arith.select %6, %28, %29 : vector<16x128xi1>, vector<16x128xf32>
    %c0_15 = arith.constant 0 : index
    %c0_16 = arith.constant 0 : index
    %c0_17 = arith.constant 0 : index
    %31 = vector.load %arg11[%c0_15, %c0_16, %c0_17] : memref<2x16x1xf32, #tpu.memory_space<vmem>>, vector<1x16x1xf32>
    %32 = vector.shape_cast %31 : vector<1x16x1xf32> to vector<16x1xf32>
    %cst_18 = arith.constant dense<0xFF800000> : vector<16xf32>
    %33 = vector.multi_reduction <maximumf>, %30, %cst_18 [1] : vector<16x128xf32> to vector<16xf32>
    %34 = vector.shape_cast %33 : vector<16xf32> to vector<16x1xf32>
    %35 = arith.maximumf %32, %34 : vector<16x1xf32>
    %36 = arith.subf %32, %35 : vector<16x1xf32>
    %37 = math.exp %36 : vector<16x1xf32>
    %38 = vector.broadcast %35 : vector<16x1xf32> to vector<16x128xf32>
    %39 = arith.subf %30, %38 : vector<16x128xf32>
    %40 = math.exp %39 : vector<16x128xf32>
    %c0_19 = arith.constant 0 : index
    %c0_20 = arith.constant 0 : index
    %c0_21 = arith.constant 0 : index
    %41 = vector.load %arg12[%c0_19, %c0_20, %c0_21] : memref<2x16x1xf32, #tpu.memory_space<vmem>>, vector<1x16x1xf32>
    %42 = vector.shape_cast %41 : vector<1x16x1xf32> to vector<16x1xf32>
    %43 = arith.mulf %37, %42 : vector<16x1xf32>
    %cst_22 = arith.constant dense<0.000000e+00> : vector<16xf32>
    %44 = vector.multi_reduction <add>, %40, %cst_22 [1] : vector<16x128xf32> to vector<16xf32>
    %45 = vector.shape_cast %44 : vector<16xf32> to vector<16x1xf32>
    %46 = arith.addf %43, %45 : vector<16x1xf32>
    %c0_23 = arith.constant 0 : index
    %c0_24 = arith.constant 0 : index
    %c0_25 = arith.constant 0 : index
    %47 = vector.load %arg12[%c0_23, %c0_24, %c0_25] : memref<2x16x1xf32, #tpu.memory_space<vmem>>, vector<1x16x1xf32>
    %48 = vector.shape_cast %47 : vector<1x16x1xf32> to vector<16x1xf32>
    %49 = vector.shape_cast %46 : vector<16x1xf32> to vector<1x16x1xf32>
    tpu.vector_store %arg12[%c0_23, %c0_24, %c0_25], %49 {strides = array<i32>} : memref<2x16x1xf32, #tpu.memory_space<vmem>>, vector<1x16x1xf32>,
    %c0_26 = arith.constant 0 : index
    %c0_27 = arith.constant 0 : index
    %c0_28 = arith.constant 0 : index
    %50 = vector.load %arg11[%c0_26, %c0_27, %c0_28] : memref<2x16x1xf32, #tpu.memory_space<vmem>>, vector<1x16x1xf32>
    %51 = vector.shape_cast %50 : vector<1x16x1xf32> to vector<16x1xf32>
    %52 = vector.shape_cast %35 : vector<16x1xf32> to vector<1x16x1xf32>
    tpu.vector_store %arg11[%c0_26, %c0_27, %c0_28], %52 {strides = array<i32>} : memref<2x16x1xf32, #tpu.memory_space<vmem>>, vector<1x16x1xf32>,
    %c0_i32_29 = arith.constant 0 : i32
    %53 = vector.broadcast %c0_i32_29 : i32 to vector<1x128xi32>
    %54 = arith.cmpi sge, %12, %53 : vector<1x128xi32>
    %c8_i32 = arith.constant 8 : i32
    %55 = vector.broadcast %c8_i32 : i32 to vector<1x128xi32>
    %56 = arith.cmpi slt, %12, %55 : vector<1x128xi32>
    %57 = arith.andi %54, %56 : vector<1x128xi1>
    %cst_30 = arith.constant 0.000000e+00 : f32
    %58 = vector.shape_cast %57 : vector<1x128xi1> to vector<1x128xi1>
    %59 = vector.broadcast %58 : vector<1x128xi1> to vector<128x128xi1>
    %60 = vector.broadcast %cst_30 : f32 to vector<128x128xf32>
    %61 = arith.select %59, %11, %60 : vector<128x128xi1>, vector<128x128xf32>
    %62 = vector.shape_cast %57 : vector<1x128xi1> to vector<1x128xi1>
    %63 = vector.broadcast %62 : vector<1x128xi1> to vector<16x128xi1>
    %64 = vector.shape_cast %37 : vector<16x1xf32> to vector<16x1xf32>
    %65 = vector.broadcast %64 : vector<16x1xf32> to vector<16x128xf32>
    %66 = arith.select %63, %65, %13 : vector<16x128xi1>, vector<16x128xf32>
    %cst_31 = arith.constant dense<0.000000e+00> : vector<16x128xf32>
    %67 = tpu.matmul %40, %61, %cst_31 {dimension_numbers = #tpu.dot_dimension_numbers<[1], [0], [0], [1], [0, 0, 1, 1], [], []>} : vector<16x128xf32>, vector<128x128xf32>, vector<16x128xf32> -> vector<16x128xf32>
    %68 = arith.addf %14, %67 : vector<16x128xf32>
    %69 = vector.extract_strided_slice %9 {offsets = [0, 1], sizes = [16, 1], strides = [1, 1]} : vector<16x2xf32> to vector<16x1xf32>
    %70 = vector.extract_strided_slice %10 {offsets = [1, 0], sizes = [1, 128], strides = [1, 1]} : vector<2x128xf32> to vector<1x128xf32>
    %71 = vector.broadcast %69 : vector<16x1xf32> to vector<16x128xf32>
    %72 = vector.broadcast %70 : vector<1x128xf32> to vector<16x128xf32>
    %73 = arith.addf %71, %72 : vector<16x128xf32>
    %c1 = arith.constant 1 : index
    %74 = memref.load %arg6[%c1] : memref<2xf32, #tpu.memory_space<smem>>
    %75 = vector.broadcast %74 : f32 to vector<16x128xf32>
    %76 = arith.mulf %8, %75 : vector<16x128xf32>
    %77 = arith.addf %73, %76 : vector<16x128xf32>
    %cst_32 = arith.constant 0.000000e+00 : f32
    %78 = vector.broadcast %cst_32 : f32 to vector<16x128xf32>
    %79 = arith.cmpf ogt, %77, %78 : vector<16x128xf32>
    %cst_33 = arith.constant 2.000000e-01 : f32
    %80 = vector.broadcast %cst_33 : f32 to vector<16x128xf32>
    %81 = arith.mulf %80, %77 : vector<16x128xf32>
    %82 = arith.select %79, %77, %81 : vector<16x128xi1>, vector<16x128xf32>
    %cst_34 = arith.constant -1.000000e+30 : f32
    %83 = vector.broadcast %cst_34 : f32 to vector<16x128xf32>
    %84 = arith.select %6, %82, %83 : vector<16x128xi1>, vector<16x128xf32>
    %c1_35 = arith.constant 1 : index
    %c0_36 = arith.constant 0 : index
    %c0_37 = arith.constant 0 : index
    %85 = vector.load %arg11[%c1_35, %c0_36, %c0_37] : memref<2x16x1xf32, #tpu.memory_space<vmem>>, vector<1x16x1xf32>
    %86 = vector.shape_cast %85 : vector<1x16x1xf32> to vector<16x1xf32>
    %cst_38 = arith.constant dense<0xFF800000> : vector<16xf32>
    %87 = vector.multi_reduction <maximumf>, %84, %cst_38 [1] : vector<16x128xf32> to vector<16xf32>
    %88 = vector.shape_cast %87 : vector<16xf32> to vector<16x1xf32>
    %89 = arith.maximumf %86, %88 : vector<16x1xf32>
    %90 = arith.subf %86, %89 : vector<16x1xf32>
    %91 = math.exp %90 : vector<16x1xf32>
    %92 = vector.broadcast %89 : vector<16x1xf32> to vector<16x128xf32>
    %93 = arith.subf %84, %92 : vector<16x128xf32>
    %94 = math.exp %93 : vector<16x128xf32>
    %c1_39 = arith.constant 1 : index
    %c0_40 = arith.constant 0 : index
    %c0_41 = arith.constant 0 : index
    %95 = vector.load %arg12[%c1_39, %c0_40, %c0_41] : memref<2x16x1xf32, #tpu.memory_space<vmem>>, vector<1x16x1xf32>
    %96 = vector.shape_cast %95 : vector<1x16x1xf32> to vector<16x1xf32>
    %97 = arith.mulf %91, %96 : vector<16x1xf32>
    %cst_42 = arith.constant dense<0.000000e+00> : vector<16xf32>
    %98 = vector.multi_reduction <add>, %94, %cst_42 [1] : vector<16x128xf32> to vector<16xf32>
    %99 = vector.shape_cast %98 : vector<16xf32> to vector<16x1xf32>
    %100 = arith.addf %97, %99 : vector<16x1xf32>
    %c1_43 = arith.constant 1 : index
    %c0_44 = arith.constant 0 : index
    %c0_45 = arith.constant 0 : index
    %101 = vector.load %arg12[%c1_43, %c0_44, %c0_45] : memref<2x16x1xf32, #tpu.memory_space<vmem>>, vector<1x16x1xf32>
    %102 = vector.shape_cast %101 : vector<1x16x1xf32> to vector<16x1xf32>
    %103 = vector.shape_cast %100 : vector<16x1xf32> to vector<1x16x1xf32>
    tpu.vector_store %arg12[%c1_43, %c0_44, %c0_45], %103 {strides = array<i32>} : memref<2x16x1xf32, #tpu.memory_space<vmem>>, vector<1x16x1xf32>,
    %c1_46 = arith.constant 1 : index
    %c0_47 = arith.constant 0 : index
    %c0_48 = arith.constant 0 : index
    %104 = vector.load %arg11[%c1_46, %c0_47, %c0_48] : memref<2x16x1xf32, #tpu.memory_space<vmem>>, vector<1x16x1xf32>
    %105 = vector.shape_cast %104 : vector<1x16x1xf32> to vector<16x1xf32>
    %106 = vector.shape_cast %89 : vector<16x1xf32> to vector<1x16x1xf32>
    tpu.vector_store %arg11[%c1_46, %c0_47, %c0_48], %106 {strides = array<i32>} : memref<2x16x1xf32, #tpu.memory_space<vmem>>, vector<1x16x1xf32>,
    %c8_i32_49 = arith.constant 8 : i32
    %107 = vector.broadcast %c8_i32_49 : i32 to vector<1x128xi32>
    %108 = arith.cmpi sge, %12, %107 : vector<1x128xi32>
    %c16_i32 = arith.constant 16 : i32
    %109 = vector.broadcast %c16_i32 : i32 to vector<1x128xi32>
    %110 = arith.cmpi slt, %12, %109 : vector<1x128xi32>
    %111 = arith.andi %108, %110 : vector<1x128xi1>
    %cst_50 = arith.constant 0.000000e+00 : f32
    %112 = vector.shape_cast %111 : vector<1x128xi1> to vector<1x128xi1>
    %113 = vector.broadcast %112 : vector<1x128xi1> to vector<128x128xi1>
    %114 = vector.broadcast %cst_50 : f32 to vector<128x128xf32>
    %115 = arith.select %113, %11, %114 : vector<128x128xi1>, vector<128x128xf32>
    %116 = vector.shape_cast %111 : vector<1x128xi1> to vector<1x128xi1>
    %117 = vector.broadcast %116 : vector<1x128xi1> to vector<16x128xi1>
    %118 = vector.shape_cast %91 : vector<16x1xf32> to vector<16x1xf32>
    %119 = vector.broadcast %118 : vector<16x1xf32> to vector<16x128xf32>
    %120 = arith.select %117, %119, %66 : vector<16x128xi1>, vector<16x128xf32>
    %cst_51 = arith.constant dense<0.000000e+00> : vector<16x128xf32>
    %121 = tpu.matmul %94, %115, %cst_51 {dimension_numbers = #tpu.dot_dimension_numbers<[1], [0], [0], [1], [0, 0, 1, 1], [], []>} : vector<16x128xf32>, vector<128x128xf32>, vector<16x128xf32> -> vector<16x128xf32>
    %122 = arith.addf %68, %121 : vector<16x128xf32>
    %c0_52 = arith.constant 0 : index
    %c0_53 = arith.constant 0 : index
    %123 = vector.load %arg13[%c0_52, %c0_53] : memref<16x128xf32, #tpu.memory_space<vmem>>, vector<16x128xf32>
    %124 = arith.mulf %123, %120 : vector<16x128xf32>
    %125 = arith.addf %124, %122 : vector<16x128xf32>
    %c0_54 = arith.constant 0 : index
    %c0_55 = arith.constant 0 : index
    %126 = vector.load %arg13[%c0_54, %c0_55] : memref<16x128xf32, #tpu.memory_space<vmem>>, vector<16x128xf32>
    tpu.vector_store %arg13[%c0_54, %c0_55], %125 {strides = array<i32>} : memref<16x128xf32, #tpu.memory_space<vmem>>, vector<16x128xf32>,
    %c0_i32_56 = arith.constant 0 : i32
    %127 = arith.cmpi eq, %arg1, %c0_i32_56 : i32
    %128 = arith.extui %127 : i1 to i32
    %c0_i32_57 = arith.constant 0 : i32
    %129 = arith.cmpi ne, %128, %c0_i32_57 : i32
    scf.if %129 {
      %130 = tpu.iota {dimensions = array<i32: 1>} : vector<1x128xi32>
      %cst_58 = arith.constant 1.000000e+00 : f32
      %131 = vector.broadcast %cst_58 : f32 to vector<16x128xf32>
      %c0_i32_59 = arith.constant 0 : i32
      %132 = vector.broadcast %c0_i32_59 : i32 to vector<1x128xi32>
      %133 = arith.cmpi sge, %130, %132 : vector<1x128xi32>
      %c8_i32_60 = arith.constant 8 : i32
      %134 = vector.broadcast %c8_i32_60 : i32 to vector<1x128xi32>
      %135 = arith.cmpi slt, %130, %134 : vector<1x128xi32>
      %136 = arith.andi %133, %135 : vector<1x128xi1>
      %c0_61 = arith.constant 0 : index
      %c0_62 = arith.constant 0 : index
      %c0_63 = arith.constant 0 : index
      %137 = vector.load %arg12[%c0_61, %c0_62, %c0_63] : memref<2x16x1xf32, #tpu.memory_space<vmem>>, vector<1x16x1xf32>
      %138 = vector.shape_cast %137 : vector<1x16x1xf32> to vector<16x1xf32>
      %139 = tpu.reciprocal %138 {approx = true} : vector<16x1xf32> -> vector<16x1xf32>
      %140 = vector.shape_cast %136 : vector<1x128xi1> to vector<1x128xi1>
      %141 = vector.broadcast %140 : vector<1x128xi1> to vector<16x128xi1>
      %142 = vector.shape_cast %139 : vector<16x1xf32> to vector<16x1xf32>
      %143 = vector.broadcast %142 : vector<16x1xf32> to vector<16x128xf32>
      %144 = arith.select %141, %143, %131 : vector<16x128xi1>, vector<16x128xf32>
      %c8_i32_64 = arith.constant 8 : i32
      %145 = vector.broadcast %c8_i32_64 : i32 to vector<1x128xi32>
      %146 = arith.cmpi sge, %130, %145 : vector<1x128xi32>
      %c16_i32_65 = arith.constant 16 : i32
      %147 = vector.broadcast %c16_i32_65 : i32 to vector<1x128xi32>
      %148 = arith.cmpi slt, %130, %147 : vector<1x128xi32>
      %149 = arith.andi %146, %148 : vector<1x128xi1>
      %c1_66 = arith.constant 1 : index
      %c0_67 = arith.constant 0 : index
      %c0_68 = arith.constant 0 : index
      %150 = vector.load %arg12[%c1_66, %c0_67, %c0_68] : memref<2x16x1xf32, #tpu.memory_space<vmem>>, vector<1x16x1xf32>
      %151 = vector.shape_cast %150 : vector<1x16x1xf32> to vector<16x1xf32>
      %152 = tpu.reciprocal %151 {approx = true} : vector<16x1xf32> -> vector<16x1xf32>
      %153 = vector.shape_cast %149 : vector<1x128xi1> to vector<1x128xi1>
      %154 = vector.broadcast %153 : vector<1x128xi1> to vector<16x128xi1>
      %155 = vector.shape_cast %152 : vector<16x1xf32> to vector<16x1xf32>
      %156 = vector.broadcast %155 : vector<16x1xf32> to vector<16x128xf32>
      %157 = arith.select %154, %156, %144 : vector<16x128xi1>, vector<16x128xf32>
      %c0_69 = arith.constant 0 : index
      %c0_70 = arith.constant 0 : index
      %158 = vector.load %arg13[%c0_69, %c0_70] : memref<16x128xf32, #tpu.memory_space<vmem>>, vector<16x128xf32>
      %159 = arith.mulf %158, %157 : vector<16x128xf32>
      %c0_71 = arith.constant 0 : index
      %c0_72 = arith.constant 0 : index
      %160 = vector.load %arg7[%c0_71, %c0_72] : memref<1x128xf32, #tpu.memory_space<vmem>>, vector<1x128xf32>
      %161 = vector.broadcast %160 : vector<1x128xf32> to vector<16x128xf32>
      %162 = arith.addf %159, %161 : vector<16x128xf32>
      %cst_73 = arith.constant 0.000000e+00 : f32
      %163 = vector.broadcast %cst_73 : f32 to vector<16x128xf32>
      %164 = arith.maximumf %162, %163 : vector<16x128xf32>
      %c0_74 = arith.constant 0 : index
      %c0_75 = arith.constant 0 : index
      %165 = vector.load %arg8[%c0_74, %c0_75] : memref<128x128xf32, #tpu.memory_space<vmem>>, vector<128x128xf32>
      %cst_76 = arith.constant dense<0.000000e+00> : vector<16x128xf32>
      %166 = tpu.matmul %164, %165, %cst_76 {dimension_numbers = #tpu.dot_dimension_numbers<[1], [0], [0], [1], [0, 0, 1, 1], [], []>} : vector<16x128xf32>, vector<128x128xf32>, vector<16x128xf32> -> vector<16x128xf32>
      %c0_77 = arith.constant 0 : index
      %c0_78 = arith.constant 0 : index
      %167 = vector.load %arg9[%c0_77, %c0_78] : memref<1x128xf32, #tpu.memory_space<vmem>>, vector<1x128xf32>
      %168 = vector.broadcast %167 : vector<1x128xf32> to vector<16x128xf32>
      %169 = arith.addf %166, %168 : vector<16x128xf32>
      %c0_79 = arith.constant 0 : index
      %c0_80 = arith.constant 0 : index
      %170 = vector.load %arg10[%c0_79, %c0_80] : memref<16x128xf32, #tpu.memory_space<vmem>>, vector<16x128xf32>
      tpu.vector_store %arg10[%c0_79, %c0_80], %169 {strides = array<i32>} : memref<16x128xf32, #tpu.memory_space<vmem>>, vector<16x128xf32>,
    } else {
    }
    return
  }
  func.func @transform_0(%arg0: i32, %arg1: i32) -> (i32, i32) {
    %c0_i32 = arith.constant 0 : i32
    %c0_i32_0 = arith.constant 0 : i32
    return %arg0, %c0_i32 : i32, i32
  }
  func.func @transform_1(%arg0: i32, %arg1: i32) -> (i32, i32) {
    %c0_i32 = arith.constant 0 : i32
    return %arg0, %arg1 : i32, i32
  }
  func.func @transform_2(%arg0: i32, %arg1: i32) -> (i32, i32) {
    %c0_i32 = arith.constant 0 : i32
    %c0_i32_0 = arith.constant 0 : i32
    return %c0_i32, %arg1 : i32, i32
  }
  func.func @transform_3(%arg0: i32, %arg1: i32) -> (i32, i32) {
    %c0_i32 = arith.constant 0 : i32
    %c0_i32_0 = arith.constant 0 : i32
    return %arg1, %c0_i32 : i32, i32
  }
  func.func @transform_4(%arg0: i32, %arg1: i32) -> i32 {
    %c0_i32 = arith.constant 0 : i32
    %c0_i32_0 = arith.constant 0 : i32
    return %c0_i32 : i32
  }
  func.func @transform_5(%arg0: i32, %arg1: i32) -> (i32, i32) {
    %c0_i32 = arith.constant 0 : i32
    %c0_i32_0 = arith.constant 0 : i32
    %c0_i32_1 = arith.constant 0 : i32
    return %c0_i32, %c0_i32_0 : i32, i32
  }
  func.func @transform_6(%arg0: i32, %arg1: i32) -> (i32, i32) {
    %c0_i32 = arith.constant 0 : i32
    %c0_i32_0 = arith.constant 0 : i32
    %c0_i32_1 = arith.constant 0 : i32
    return %c0_i32, %c0_i32_0 : i32, i32
  }
  func.func @transform_7(%arg0: i32, %arg1: i32) -> (i32, i32) {
    %c0_i32 = arith.constant 0 : i32
    %c0_i32_0 = arith.constant 0 : i32
    %c0_i32_1 = arith.constant 0 : i32
    return %c0_i32, %c0_i32_0 : i32, i32
  }
  func.func @transform_8(%arg0: i32, %arg1: i32) -> (i32, i32) {
    %c0_i32 = arith.constant 0 : i32
    %c0_i32_0 = arith.constant 0 : i32
    return %arg0, %c0_i32 : i32, i32
  }
}

</mosaic_0001>

<bundles_post_ra>
// kernel: gat_net_forward.3
= control target key start
LH: loop header
LB: loop body
LE: loop exit
PB: predicated region body
PF: predicated region fallthrough
CT: control target
= control target key end

     0   :  { %13 = vsyncpa [#allocation6], 0  ;;  %s1291_s0 = inlined_call_operand.vmem [shape: f32[16,2], index: 0, kind: input, shape index: {}]   ;;  %s1292_s1 = inlined_call_operand.vmem [shape: bf16[16,128], index: 1, kind: input, shape index: {}]   ;;  %s1293_s2 = inlined_call_operand.vmem [shape: f32[2,128], index: 2, kind: input, shape index: {}]   ;;  %s1294_s3 = inlined_call_operand.vmem [shape: f32[128,128], index: 3, kind: input, shape index: {}]   ;;  %s1295_s4 = inlined_call_operand.vmem [shape: f32[2], index: 4, kind: input, shape index: {}]   ;;  %s1296_s5 = inlined_call_operand.vmem [shape: f32[1,128], index: 5, kind: input, shape index: {}]   ;;  %s1297_s6 = inlined_call_operand.vmem [shape: f32[128,128], index: 6, kind: input, shape index: {}]   ;;  %s1298_s7 = inlined_call_operand.vmem [shape: f32[1,128], index: 7, kind: input, shape index: {}]   ;;  %s1299_s8 = inlined_call_operand.vmem [shape: f32[16,128], index: 8, kind: output, shape index: {}]  }
   0x1   :  { %s28_s29 = sshll.u32 %s1295_s4, 4  ;;  %s29_s29 = int_to_ptr.vmem [resolvable:$true] %s28_s29 }
   0x2   :  { %s850_s30 = scalar_lea.vmem %s29_s29, 16  ;;  %p855_p1 = scmp.lt.s32.totalorder %s29_s29, %s29_s29 }
   0x3   :  { %p851_p0 = scmp.ne.s32.totalorder %s29_s29, %s850_s30  ;;  %p856_p2 = scmp.lt.s32.totalorder %s850_s30, %s850_s30 }
   0x5   :  { %p857_p3 = por %p856_p2, %p855_p1 }
   0x7   :  { %p858_p4 = pnand %p857_p3, %p851_p0 }
   0x9   :  { %861 = shalt.err (!%p858_p4)
}
   0xa   :  { %s864_s9 = smov [#allocation5]  }
   0xb   :  { %31 = dma.vmem_to_smem %s29_s29, 16, %s864_s9, [#allocation6]  }
   0xc   :  { %862 = dma.done.wait [#allocation6], 16  }
   0xd   :  { %863 = vsyncadd [#allocation6], 4294967280 }
   0xe   :  { %41 = sfence }
   0xf   :  { %v67_v0 = vld [vmem:[%s1291_s0] sm:$0xff]  ;;  %v68_v1 = vld [vmem:[%s1291_s0 + $0x8] sm:$0xff]  ;;  %v865_v2 = vmov 0   ;;  %v866_v3 = vmov 1   ;;  %v86_v5 = vlaneseq  ;;  %s104_s15 = sld [smem:[#allocation5]]  ;;  %vm867_vm2 = vmmov 1  }
  0x10   :  { %820 = vset.pattern.permute.xlu0 %v865_v2  ;;  %822 = vset.pattern.permute.xlu1 %v865_v2  ;;  %v652_v4 = vld [vmem:[%s1292_s1] sm:$0xff]   ;;  %s616_s0 = sld [smem:[#allocation5 + $0x1]]  ;;  %vm46_vm9 = vcmask 7168   ;;  %v868_v44 = vmov -inf   ;;  %v869_v50 = vmov 0.0   ;;  %v85_v52 = vld [vmem:[%s1294_s3 + $0x78] sm:$0xff] }
  0x11   :  { %90 = vperm.xlu0 %820, %v67_v0   ;;  %95 = vperm.xlu1 %822, %v68_v1   ;;  %v653_v6 = vunpack.c.l.bf16 %v652_v4  ;;  %v654_v7 = vunpack.c.h.bf16 %v652_v4  ;;  %v99_v8 = vshrl.u32 %v86_v5, 7  ;;  %v69_v11 = vld [vmem:[%s1293_s2] sm:$0x3]  ;;  %47 = vst.msk [vmem:[#allocation2] sm:$0xff] %vm46_vm9, %v868_v44  ;;  %48 = vst.msk [vmem:[#allocation2 + $0x8] sm:$0xff] %vm46_vm9, %v868_v44  ;;  %v966_v49 = vand.u32 127, %v86_v5 }
  0x12   :  { %49 = vst.msk [vmem:[#allocation2 + $0x10] sm:$0xff] %vm46_vm9, %v868_v44  ;;  %50 = vst.msk [vmem:[#allocation2 + $0x18] sm:$0xff] %vm46_vm9, %v868_v44  ;;  %v84_v53 = vld [vmem:[%s1294_s3 + $0x70] sm:$0xff]  ;;  %v83_v54 = vld [vmem:[%s1294_s3 + $0x68] sm:$0xff] }
  0x13   :  { %vm61_vm0 = vcmp.ne.f32.partialorder %v653_v6, %v653_v6  ;;  %vm62_vm1 = vcmp.ne.f32.partialorder %v654_v7, %v654_v7  ;;  %v100_v9 = vsub.s32 0, %v99_v8  ;;  %v206_v16 = vsub.s32 1, %v99_v8  ;;  %51 = vst.msk [vmem:[#allocation3] sm:$0xff] %vm46_vm9, %v869_v50  ;;  %52 = vst.msk [vmem:[#allocation3 + $0x8] sm:$0xff] %vm46_vm9, %v869_v50  ;;  %v82_v56 = vld [vmem:[%s1294_s3 + $0x60] sm:$0xff]  ;;  %v81_v59 = vld [vmem:[%s1294_s3 + $0x58] sm:$0xff] }
  0x14   :  { %vm927_vm3 = vmxor %vm61_vm0, %vm867_vm2  ;;  %vm270_vm10 = vcmp.ge.s32.totalorder %v966_v49, 8  ;;  %vm271_vm11 = vcmp.lt.s32.totalorder %v966_v49, 16  ;;  %53 = vst.msk [vmem:[#allocation3 + $0x10] sm:$0xff] %vm46_vm9, %v869_v50  ;;  %vm164_vm12 = vcmp.lt.s32.totalorder %v966_v49, 8  ;;  %v80_v63 = vld [vmem:[%s1294_s3 + $0x50] sm:$0xff]  ;;  %v77_v10 = vld [vmem:[%s1294_s3 + $0x38] sm:$0xff] }
  0x15   :  { %821 = vset.pattern.permute.xlu0 %v866_v3  ;;  %823 = vset.pattern.permute.xlu1 %v866_v3  ;;  %vm934_vm4 = vmxor %vm62_vm1, %vm867_vm2  ;;  %v105_v13 = vstv %s104_s15  ;;  %v65_v14 = vsel %vm927_vm3, %v653_v6, 0.0  ;;  %v101_v15 = vrot.slane %v69_v11, %v100_v9  ;;  %v207_v25 = vrot.slane %v69_v11, %v206_v16  ;;  %54 = vst.msk [vmem:[#allocation3 + $0x18] sm:$0xff] %vm46_vm9, %v869_v50  ;;  %v78_v6 = vld [vmem:[%s1294_s3 + $0x40] sm:$0xff]  ;;  %v76_v12 = vld [vmem:[%s1294_s3 + $0x30] sm:$0xff] }
  0x16   :  { %197 = vperm.xlu0 %821, %v67_v0   ;;  %201 = vperm.xlu1 %823, %v68_v1   ;;  %v66_v17 = vsel %vm934_vm4, %v654_v7, 0.0  ;;  %v106_v18 = vmul.f32 %v105_v13, %v65_v14  ;;  %v211_v22 = vstv %s616_s0  ;;  %vm975_vm13 = vmand %vm270_vm10, %vm271_vm11  ;;  %v73_v16 = vld [vmem:[%s1294_s3 + $0x18] sm:$0xff]  ;;  %v521_v50 = vld [vmem:[%s1297_s6 + $0x50] sm:$0xff] }
  0x17   :  { %v107_v24 = vmul.f32 %v105_v13, %v66_v17  ;;  %v212_v27 = vmul.f32 %v211_v22, %v65_v14  ;;  %v213_v28 = vmul.f32 %v211_v22, %v66_v17  ;;  %744 = vmatprep.subr.msk.mxu1 %vm164_vm12, %v85_v52  ;;  %709 = vmatprep.subr.msk.mxu0 %vm975_vm13, %v85_v52  ;;  %v75_v14 = vld [vmem:[%s1294_s3 + $0x28] sm:$0xff]  ;;  %v72_v17 = vld [vmem:[%s1294_s3 + $0x10] sm:$0xff]  ;;  %v526_v44 = vld [vmem:[%s1297_s6 + $0x78] sm:$0xff] }
  0x18   :  { %745 = vmatpush3.msk.msra.mxu1 %vm164_vm12, %v85_v52  ;;  %710 = vmatpush3.msk.msra.mxu0 %vm975_vm13, %v85_v52  ;;  %v1012_v55 = vld [vmem:[#allocation2] sm:$0xff]  ;;  %v1070_v5 = vld [vmem:[#allocation2 + $0x8] sm:$0xff] }
  0x19   :  { %746 = vmatprep.subr.msk.mxu1 %vm164_vm12, %v84_v53  ;;  %711 = vmatprep.subr.msk.mxu0 %vm975_vm13, %v84_v53  ;;  %v1040_v61 = vld [vmem:[#allocation2 + $0x10] sm:$0xff]  ;;  %v1042_v62 = vld [vmem:[#allocation2 + $0x18] sm:$0xff] }
  0x1a   :  { %824 = vset.pattern.permute.xlu0 %v865_v2  ;;  %825 = vset.pattern.permute.xlu1 %v865_v2  ;;  %v79_v2 = vld [vmem:[%s1294_s3 + $0x48] sm:$0xff]  ;;  %v148_v52 = vld [vmem:[#allocation3] sm:$0xff] }
  0x1b   :  { %747 = vmatpush3.msk.msra.mxu1 %vm164_vm12, %v84_v53  ;;  %712 = vmatpush3.msk.msra.mxu0 %vm975_vm13, %v84_v53 }
  0x1c   :  { %748 = vmatprep.subr.msk.mxu1 %vm164_vm12, %v83_v54  ;;  %713 = vmatprep.subr.msk.mxu0 %vm975_vm13, %v83_v54 }
  0x1d   :  { %749 = vmatpush3.msk.msra.mxu1 %vm164_vm12, %v83_v54  ;;  %714 = vmatpush3.msk.msra.mxu0 %vm975_vm13, %v83_v54 }
  0x1e   :  { %750 = vmatprep.subr.msk.mxu1 %vm164_vm12, %v82_v56  ;;  %715 = vmatprep.subr.msk.mxu0 %vm975_vm13, %v82_v56 }
  0x1f   :  { %751 = vmatpush3.msk.msra.mxu1 %vm164_vm12, %v82_v56  ;;  %716 = vmatpush3.msk.msra.mxu0 %vm975_vm13, %v82_v56  ;;  %v256_v56 = vld [vmem:[#allocation3 + $0x10] sm:$0xff] }
  0x20   :  { %752 = vmatprep.subr.msk.mxu1 %vm164_vm12, %v81_v59  ;;  %717 = vmatprep.subr.msk.mxu0 %vm975_vm13, %v81_v59 }
  0x21   :  { %753 = vmatpush3.msk.msra.mxu1 %vm164_vm12, %v81_v59  ;;  %718 = vmatpush3.msk.msra.mxu0 %vm975_vm13, %v81_v59  ;;  %v149_v59 = vld [vmem:[#allocation3 + $0x8] sm:$0xff] }
  0x22   :  { %754 = vmatprep.subr.msk.mxu1 %vm164_vm12, %v80_v63  ;;  %719 = vmatprep.subr.msk.mxu0 %vm975_vm13, %v80_v63 }
  0x23   :  { %755 = vmatpush3.msk.msra.mxu1 %vm164_vm12, %v80_v63  ;;  %720 = vmatpush3.msk.msra.mxu0 %vm975_vm13, %v80_v63  ;;  %v257_v63 = vld [vmem:[#allocation3 + $0x18] sm:$0xff] }
  0x24   :  { %756 = vmatprep.subr.msk.mxu1 %vm164_vm12, %v79_v2  ;;  %721 = vmatprep.subr.msk.mxu0 %vm975_vm13, %v79_v2 }
  0x25   :  { %757 = vmatpush3.msk.msra.mxu1 %vm164_vm12, %v79_v2  ;;  %722 = vmatpush3.msk.msra.mxu0 %vm975_vm13, %v79_v2 }
  0x26   :  { %758 = vmatprep.subr.msk.mxu1 %vm164_vm12, %v78_v6  ;;  %723 = vmatprep.subr.msk.mxu0 %vm975_vm13, %v78_v6 }
  0x27   :  { %759 = vmatpush3.msk.msra.mxu1 %vm164_vm12, %v78_v6  ;;  %724 = vmatpush3.msk.msra.mxu0 %vm975_vm13, %v78_v6 }
  0x28   :  { %760 = vmatprep.subr.msk.mxu1 %vm164_vm12, %v77_v10  ;;  %725 = vmatprep.subr.msk.mxu0 %vm975_vm13, %v77_v10 }
  0x29   :  { %761 = vmatpush3.msk.msra.mxu1 %vm164_vm12, %v77_v10  ;;  %726 = vmatpush3.msk.msra.mxu0 %vm975_vm13, %v77_v10 }
  0x2a   :  { %762 = vmatprep.subr.msk.mxu1 %vm164_vm12, %v76_v12  ;;  %727 = vmatprep.subr.msk.mxu0 %vm975_vm13, %v76_v12 }
  0x2b   :  { %763 = vmatpush3.msk.msra.mxu1 %vm164_vm12, %v76_v12  ;;  %728 = vmatpush3.msk.msra.mxu0 %vm975_vm13, %v76_v12  ;;  %v517_v12 = vld [vmem:[%s1297_s6 + $0x30] sm:$0xff] }
  0x2c   :  { %764 = vmatprep.subr.msk.mxu1 %vm164_vm12, %v75_v14  ;;  %729 = vmatprep.subr.msk.mxu0 %vm975_vm13, %v75_v14 }
  0x2d   :  { %765 = vmatpush3.msk.msra.mxu1 %vm164_vm12, %v75_v14  ;;  %730 = vmatpush3.msk.msra.mxu0 %vm975_vm13, %v75_v14 }
  0x8c   :  { %v91_v19 = vpop.permute.xlu0 %90  ;;  %v96_v20 = vpop.permute.xlu1 %95 }
  0x8d   :  { %v102_v21 = vadd.f32 %v101_v15, %v91_v19  ;;  %v103_v23 = vadd.f32 %v101_v15, %v96_v20  ;;  %v74_v15 = vld [vmem:[%s1294_s3 + $0x20] sm:$0xff] }
  0x8e   :  { %766 = vmatprep.subr.msk.mxu1 %vm164_vm12, %v74_v15  ;;  %731 = vmatprep.subr.msk.mxu0 %vm975_vm13, %v74_v15  ;;  %v70_v19 = vld [vmem:[%s1294_s3] sm:$0xff] }
  0x8f   :  { %v108_v26 = vadd.f32 %v106_v18, %v102_v21  ;;  %v109_v30 = vadd.f32 %v107_v24, %v103_v23  ;;  %767 = vmatpush3.msk.msra.mxu1 %vm164_vm12, %v74_v15  ;;  %732 = vmatpush3.msk.msra.mxu0 %vm975_vm13, %v74_v15  ;;  %v71_v18 = vld [vmem:[%s1294_s3 + $0x8] sm:$0xff]  ;;  %v515_v15 = vld [vmem:[%s1297_s6 + $0x20] sm:$0xff] }
  0x90   :  { %768 = vmatprep.subr.msk.mxu1 %vm164_vm12, %v73_v16  ;;  %733 = vmatprep.subr.msk.mxu0 %vm975_vm13, %v73_v16 }
  0x91   :  { %v198_v29 = vpop.permute.xlu0 %197  ;;  %vm110_vm5 = vcmp.gt.f32.partialorder %v108_v26, 0.0  ;;  %v112_v31 = vmul.f32 0.2, %v108_v26  ;;  %v202_v32 = vpop.permute.xlu1 %201  ;;  %v113_v39 = vmul.f32 0.2, %v109_v30  ;;  %vm111_vm8 = vcmp.gt.f32.partialorder %v109_v30, 0.0  ;;  %769 = vmatpush3.msk.msra.mxu1 %vm164_vm12, %v73_v16  ;;  %734 = vmatpush3.msk.msra.mxu0 %vm975_vm13, %v73_v16 }
  0x92   :  { %v208_v33 = vadd.f32 %v207_v25, %v198_v29  ;;  %v209_v34 = vadd.f32 %v207_v25, %v202_v32  ;;  %770 = vmatprep.subr.msk.mxu1 %vm164_vm12, %v72_v17  ;;  %735 = vmatprep.subr.msk.mxu0 %vm975_vm13, %v72_v17  ;;  %v514_v16 = vld [vmem:[%s1297_s6 + $0x18] sm:$0xff] }
  0x93   :  { %v114_v35 = vsel %vm110_vm5, %v108_v26, %v112_v31  ;;  %v115_v47 = vsel %vm111_vm8, %v109_v30, %v113_v39  ;;  %771 = vmatpush3.msk.msra.mxu1 %vm164_vm12, %v72_v17  ;;  %736 = vmatpush3.msk.msra.mxu0 %vm975_vm13, %v72_v17 }
  0x94   :  { %v214_v36 = vadd.f32 %v212_v27, %v208_v33  ;;  %v944_v37 = vsel %vm927_vm3, %v114_v35, -1e+30  ;;  %v215_v38 = vadd.f32 %v213_v28, %v209_v34  ;;  %v963_v48 = vsel %vm934_vm4, %v115_v47, -1e+30  ;;  %772 = vmatprep.subr.msk.mxu1 %vm164_vm12, %v71_v18  ;;  %737 = vmatprep.subr.msk.mxu0 %vm975_vm13, %v71_v18  ;;  %v523_v47 = vld [vmem:[%s1297_s6 + $0x60] sm:$0xff] }
  0x95   :  { %120 = vmax.xlane.f32.xlu1 %v944_v37  ;;  %773 = vmatpush3.msk.msra.mxu1 %vm164_vm12, %v71_v18 }
  0x96   :  { %vm216_vm6 = vcmp.gt.f32.partialorder %v214_v36, 0.0  ;;  %v218_v40 = vmul.f32 0.2, %v214_v36  ;;  %vm217_vm7 = vcmp.gt.f32.partialorder %v215_v38, 0.0  ;;  %v219_v41 = vmul.f32 0.2, %v215_v38  ;;  %774 = vmatprep.subr.msk.mxu1 %vm164_vm12, %v70_v19  ;;  %738 = vmatpush3.msk.msra.mxu0 %vm975_vm13, %v71_v18 }
  0x97   :  { %775 = vmatpush3.msk.msra.mxu1 %vm164_vm12, %v70_v19  ;;  %739 = vmatprep.subr.msk.mxu0 %vm975_vm13, %v70_v19  ;;  %v513_v18 = vld [vmem:[%s1297_s6 + $0x10] sm:$0xff] }
  0x98   :  { %v220_v42 = vsel %vm216_vm6, %v214_v36, %v218_v40  ;;  %v221_v43 = vsel %vm217_vm7, %v215_v38, %v219_v41  ;;  %740 = vmatpush3.msk.msra.mxu0 %vm975_vm13, %v70_v19  ;;  %v512_v19 = vld [vmem:[%s1297_s6 + $0x8] sm:$0xff] }
  0x99   :  { %v953_v45 = vsel %vm927_vm3, %v220_v42, -1e+30  ;;  %v957_v46 = vsel %vm934_vm4, %v221_v43, -1e+30  ;;  %779 = vmatprep.subr.mxu0 %v526_v44 }
  0x9a   :  { %227 = vmax.xlane.f32.xlu0 %v953_v45  ;;  %229 = vmax.xlane.f32.xlu1 %v957_v46 }
  0x9e   :  { %122 = vmax.xlane.f32.xlu0 %v963_v48 }
 0x11e   :  { %v121_v57 = vpop.xlane.xlu1 %120 }
 0x11f   :  { %v1022_v58 = vmax.f32 %v1012_v55, %v121_v57 }
 0x121   :  { %v126_v60 = vsub.f32 %v1012_v55, %v1022_v58  ;;  %161 = vst.msk [vmem:[#allocation2] sm:$0xff] %vm46_vm9, %v1022_v58  ;;  %134 = vperm.xlu0 %824, %v1022_v58  }
 0x123   :  { %v228_v0 = vpop.xlane.xlu0 %227  ;;  %v230_v1 = vpop.xlane.xlu1 %229  ;;  %v128_v36 = vmul.f32 1.442695, %v126_v60 }
 0x124   :  { %v1061_v3 = vmax.f32 %v1040_v61, %v228_v0  ;;  %v1064_v4 = vmax.f32 %v1042_v62, %v230_v1 }
 0x126   :  { %v233_v7 = vsub.f32 %v1040_v61, %v1061_v3  ;;  %268 = vst.msk [vmem:[#allocation2 + $0x10] sm:$0xff] %vm46_vm9, %v1061_v3  ;;  %241 = vperm.xlu1 %825, %v1061_v3   ;;  %v234_v8 = vsub.f32 %v1042_v62, %v1064_v4  ;;  %269 = vst.msk [vmem:[#allocation2 + $0x18] sm:$0xff] %vm46_vm9, %v1064_v4 }
 0x127   :  { %v123_v9 = vpop.xlane.xlu0 %122 }
 0x128   :  { %v1098_v11 = vmax.f32 %v1070_v5, %v123_v9  ;;  %v235_v38 = vmul.f32 1.442695, %v233_v7  ;;  %v237_v39 = vmul.f32 1.442695, %v234_v8  ;;  %v520_v7 = vld [vmem:[%s1297_s6 + $0x48] sm:$0xff]  ;;  %v519_v8 = vld [vmem:[%s1297_s6 + $0x40] sm:$0xff] }
 0x129   :  { %v518_v9 = vld [vmem:[%s1297_s6 + $0x38] sm:$0xff] }
 0x12a   :  { %v127_v13 = vsub.f32 %v1070_v5, %v1098_v11  ;;  %162 = vst.msk [vmem:[#allocation2 + $0x8] sm:$0xff] %vm46_vm9, %v1098_v11  ;;  %139 = vperm.xlu1 %825, %v1098_v11  }
 0x12e   :  { %246 = vperm.xlu1 %825, %v1064_v4  }
 0x19c   :  { %v135_v20 = vpop.permute.xlu0 %134 }
 0x19d   :  { %v142_v21 = vsub.f32 %v944_v37, %v135_v20  ;;  %v130_v37 = vmul.f32 1.442695, %v127_v13  ;;  %v516_v13 = vld [vmem:[%s1297_s6 + $0x28] sm:$0xff] }
 0x19f   :  { %v144_v22 = vmul.f32 1.442695, %v142_v21  ;;  %v511_v21 = vld [vmem:[%s1297_s6] sm:$0xff] }
 0x1a1   :  { %826 = vpow2.f32 %v144_v22  ;;  %v242_v23 = vpop.permute.xlu1 %241 }
 0x1a2   :  { %v249_v24 = vsub.f32 %v953_v45, %v242_v23  ;;  %v525_v45 = vld [vmem:[%s1297_s6 + $0x70] sm:$0xff] }
 0x1a4   :  { %v251_v25 = vmul.f32 1.442695, %v249_v24 }
 0x1a5   :  { %v140_v26 = vpop.permute.xlu1 %139 }
 0x1a6   :  { %828 = vpow2.f32 %v251_v25  ;;  %v143_v27 = vsub.f32 %v963_v48, %v140_v26  ;;  %v522_v48 = vld [vmem:[%s1297_s6 + $0x58] sm:$0xff] }
 0x1a8   :  { %v146_v28 = vmul.f32 1.442695, %v143_v27 }
 0x1a9   :  { %v247_v29 = vpop.permute.xlu1 %246 }
 0x1aa   :  { %830 = vpow2.f32 %v146_v28  ;;  %v250_v30 = vsub.f32 %v957_v46, %v247_v29  ;;  %v524_v46 = vld [vmem:[%s1297_s6 + $0x68] sm:$0xff] }
 0x1ac   :  { %v253_v31 = vmul.f32 1.442695, %v250_v30 }
 0x1ae   :  { %v827_v32 = vpop.eup %826  ;;  %832 = vpow2.f32 %v253_v31 }
 0x1af   :  { %152 = vadd.xlane.f32.xlu1 %v827_v32  ;;  %776 = vmatprep.mubr.f32.mxu1 %v827_v32  ;;  %834 = vpow2.f32 %v128_v36 }
 0x1b0   :  { %836 = vpow2.f32 %v130_v37 }
 0x1b1   :  { %838 = vpow2.f32 %v235_v38 }
 0x1b2   :  { %840 = vpow2.f32 %v237_v39  ;;  %v649_v39 = vld [vmem:[%s1296_s5] ss:$0 sm:$0xff] }
 0x1b3   :  { %v829_v33 = vpop.eup %828 }
 0x1b4   :  { %741 = vmatprep.mubr.f32.mxu0 %v829_v33  ;;  %260 = vadd.xlane.f32.xlu1 %v829_v33 }
 0x1b7   :  { %v831_v34 = vpop.eup %830 }
 0x1b8   :  { %154 = vadd.xlane.f32.xlu0 %v831_v34  ;;  %777 = vmatmul.mubr.f32.vlgmr.msra.gmra.mxu1 %v831_v34 }
 0x1bb   :  { %v833_v35 = vpop.eup %832 }
 0x1bc   :  { %742 = vmatmul.mubr.f32.vlgmr.msra.gmra.mxu0 %v833_v35  ;;  %262 = vadd.xlane.f32.xlu1 %v833_v35  ;;  %v835_v40 = vpop.eup %834 }
 0x1bd   :  { %v837_v41 = vpop.eup %836  ;;  %780 = vmatpush3.msra.mxu0 %v526_v44  ;;  %v150_v53 = vmul.f32 %v835_v40, %v148_v52 }
 0x1be   :  { %v839_v42 = vpop.eup %838  ;;  %781 = vmatprep.subr.mxu0 %v525_v45  ;;  %v151_v61 = vmul.f32 %v837_v41, %v149_v59 }
 0x1bf   :  { %v841_v43 = vpop.eup %840  ;;  %782 = vmatpush3.msra.mxu0 %v525_v45  ;;  %v258_v57 = vmul.f32 %v839_v42, %v256_v56 }
 0x1c0   :  { %783 = vmatprep.subr.mxu0 %v524_v46  ;;  %v259_v2 = vmul.f32 %v841_v43, %v257_v63 }
 0x1c1   :  { %784 = vmatpush3.msra.mxu0 %v524_v46 }
 0x1c2   :  { %785 = vmatprep.subr.mxu0 %v523_v47 }
 0x1c3   :  { %786 = vmatpush3.msra.mxu0 %v523_v47 }
 0x1c4   :  { %787 = vmatprep.subr.mxu0 %v522_v48 }
 0x1c5   :  { %788 = vmatpush3.msra.mxu0 %v522_v48 }
 0x1c6   :  { %789 = vmatprep.subr.mxu0 %v521_v50 }
 0x1c7   :  { %790 = vmatpush3.msra.mxu0 %v521_v50 }
 0x1c8   :  { %791 = vmatprep.subr.mxu0 %v520_v7 }
 0x1c9   :  { %792 = vmatpush3.msra.mxu0 %v520_v7 }
 0x1ca   :  { %793 = vmatprep.subr.mxu0 %v519_v8 }
 0x1cb   :  { %794 = vmatpush3.msra.mxu0 %v519_v8 }
 0x1cc   :  { %795 = vmatprep.subr.mxu0 %v518_v9 }
 0x1cd   :  { %186 = vperm.xlu1 %825, %v835_v40   ;;  %796 = vmatpush3.msra.mxu0 %v518_v9 }
 0x1ce   :  { %191 = vperm.xlu0 %824, %v837_v41   ;;  %797 = vmatprep.subr.mxu0 %v517_v12 }
 0x1cf   :  { %798 = vmatpush3.msra.mxu0 %v517_v12 }
 0x1d0   :  { %799 = vmatprep.subr.mxu0 %v516_v13 }
 0x1d1   :  { %293 = vperm.xlu1 %825, %v839_v42   ;;  %800 = vmatpush3.msra.mxu0 %v516_v13 }
 0x1d2   :  { %801 = vmatprep.subr.mxu0 %v515_v15 }
 0x1d3   :  { %802 = vmatpush3.msra.mxu0 %v515_v15 }
 0x1d4   :  { %803 = vmatprep.subr.mxu0 %v514_v16 }
 0x1d5   :  { %298 = vperm.xlu1 %825, %v841_v43   ;;  %804 = vmatpush3.msra.mxu0 %v514_v16 }
 0x1d6   :  { %805 = vmatprep.subr.mxu0 %v513_v18 }
 0x1d7   :  { %806 = vmatpush3.msra.mxu0 %v513_v18 }
 0x1d8   :  { %807 = vmatprep.subr.mxu0 %v512_v19 }
 0x1d9   :  { %808 = vmatpush3.msra.mxu0 %v512_v19 }
 0x1da   :  { %809 = vmatprep.subr.mxu0 %v511_v21 }
 0x1db   :  { %810 = vmatpush3.msra.mxu0 %v511_v21 }
 0x238   :  { %v153_v54 = vpop.xlane.xlu1 %152 }
 0x239   :  { %v156_v55 = vadd.f32 %v153_v54, %v150_v53 }
 0x23b   :  { %159 = vst.msk [vmem:[#allocation3] sm:$0xff] %vm46_vm9, %v156_v55 }
 0x23d   :  { %v261_v58 = vpop.xlane.xlu1 %260 }
 0x23e   :  { %v264_v60 = vadd.f32 %v261_v58, %v258_v57  ;;  %v650_v57 = vld [vmem:[%s1298_s7] ss:$0 sm:$0xff] }
 0x240   :  { %266 = vst.msk [vmem:[#allocation3 + $0x10] sm:$0xff] %vm46_vm9, %v264_v60 }
 0x241   :  { %v155_v62 = vpop.xlane.xlu0 %154 }
 0x242   :  { %v157_v0 = vadd.f32 %v155_v62, %v151_v61  ;;  %v464_v1 = vld [vmem:[#allocation3] sm:$0xff] }
 0x243   :  { %842 = vrcp.f32 %v464_v1 }
 0x244   :  { %160 = vst.msk [vmem:[#allocation3 + $0x8] sm:$0xff] %vm46_vm9, %v157_v0 }
 0x245   :  { %v263_v3 = vpop.xlane.xlu1 %262 }
 0x246   :  { %v265_v4 = vadd.f32 %v263_v3, %v259_v2 }
 0x247   :  { %v480_v5 = vld [vmem:[#allocation3 + $0x10] sm:$0xff] }
 0x248   :  { %267 = vst.msk [vmem:[#allocation3 + $0x18] sm:$0xff] %vm46_vm9, %v265_v4  ;;  %844 = vrcp.f32 %v480_v5 }
 0x249   :  { %v187_v22 = vpop.permute.xlu1 %186  ;;  %v192_v34 = vpop.permute.xlu0 %191 }
 0x24a   :  { %v194_v28 = vsel %vm164_vm12, %v187_v22, 1.0  ;;  %v195_v40 = vsel %vm164_vm12, %v192_v34, 1.0 }
 0x24b   :  { %v465_v6 = vld [vmem:[#allocation3 + $0x8] sm:$0xff] }
 0x24c   :  { %846 = vrcp.f32 %v465_v6 }
 0x24d   :  { %v294_v23 = vpop.permute.xlu1 %293 }
 0x24e   :  { %v301_v29 = vsel %vm975_vm13, %v294_v23, %v194_v28 }
 0x24f   :  { %v481_v10 = vld [vmem:[#allocation3 + $0x18] sm:$0xff]  ;;  %v455_v33 = vmul.f32 0.0, %v301_v29 }
 0x250   :  { %v843_v11 = vpop.eup %842  ;;  %848 = vrcp.f32 %v481_v10 }
 0x251   :  { %470 = vperm.xlu1 %825, %v843_v11   ;;  %v299_v25 = vpop.permute.xlu1 %298 }
 0x252   :  { %v302_v42 = vsel %vm975_vm13, %v299_v25, %v195_v40 }
 0x253   :  { %v456_v46 = vmul.f32 0.0, %v302_v42 }
 0x255   :  { %v845_v14 = vpop.eup %844 }
 0x256   :  { %486 = vperm.xlu1 %825, %v845_v14  }
 0x259   :  { %v847_v17 = vpop.eup %846 }
 0x25a   :  { %475 = vperm.xlu0 %824, %v847_v17  }
 0x25d   :  { %v849_v20 = vpop.eup %848 }
 0x25e   :  { %491 = vperm.xlu0 %824, %v849_v20  }
 0x278   :  { %v778_v26 = vpop.f32.mrf.mxu1 }
 0x27a   :  { %v444_v30 = vpop.f32.mrf.mxu1 }
 0x27c   :  { %v743_v24 = vpop.f32.mrf.mxu0 }
 0x27d   :  { %v450_v43 = vadd.f32 %v778_v26, %v743_v24 }
 0x27e   :  { %v369_v27 = vpop.f32.mrf.mxu0 }
 0x27f   :  { %v445_v32 = vadd.f32 %v444_v30, %v369_v27  ;;  %v458_v48 = vadd.f32 %v456_v46, %v450_v43 }
 0x281   :  { %v457_v35 = vadd.f32 %v455_v33, %v445_v32 }
 0x2cc   :  { %v471_v31 = vpop.permute.xlu1 %470 }
 0x2cd   :  { %v478_v36 = vsel %vm164_vm12, %v471_v31, 1.0 }
 0x2d1   :  { %v487_v37 = vpop.permute.xlu1 %486 }
 0x2d2   :  { %v494_v38 = vsel %vm975_vm13, %v487_v37, %v478_v36 }
 0x2d3   :  { %v498_v41 = vmul.f32 %v494_v38, %v457_v35 }
 0x2d5   :  { %v476_v44 = vpop.permute.xlu0 %475  ;;  %v507_v45 = vadd.f32 %v649_v39, %v498_v41 }
 0x2d6   :  { %v479_v50 = vsel %vm164_vm12, %v476_v44, 1.0 }
 0x2d7   :  { %v509_v47 = vmax.f32 %v507_v45, 0.0 }
 0x2d9   :  { %v492_v52 = vpop.permute.xlu0 %491  ;;  %811 = vmatprep.mubr.f32.mxu0 %v509_v47 }
 0x2da   :  { %v495_v53 = vsel %vm975_vm13, %v492_v52, %v479_v50 }
 0x2db   :  { %v499_v54 = vmul.f32 %v495_v53, %v458_v48 }
 0x2dd   :  { %v508_v55 = vadd.f32 %v649_v39, %v499_v54 }
 0x2df   :  { %v510_v56 = vmax.f32 %v508_v55, 0.0 }
 0x2e1   :  { %812 = vmatmul.mubr.f32.vlgmr.msra.gmra.mxu0 %v510_v56 }
 0x3a1   :  { %v813_v58 = vpop.f32.mrf.mxu0 }
 0x3a2   :  { %v606_v59 = vadd.f32 %v813_v58, %v650_v57 }
 0x3a3   :  { %v600_v60 = vpop.f32.mrf.mxu0 }
 0x3a4   :  { %610 = vst [vmem:[%s1299_s8 + $0x8] sm:$0xff] %v606_v59  ;;  %v601_v49 = vadd.f32 %v650_v57, %v600_v60 }
 0x3a6   :  { %609 = vst [vmem:[%s1299_s8] sm:$0xff] %v601_v49 }
 0x3a7   :  { %615 = vsyncpa [#allocation6], 1 }

// kernel: gat_net_forward.2
= control target key start
LH: loop header
LB: loop body
LE: loop exit
PB: predicated region body
PF: predicated region fallthrough
CT: control target
= control target key end

     0   :  { %11 = vsyncpa [#allocation6], 0  ;;  %s1072_s0 = inlined_call_operand.vmem [shape: f32[16,2], index: 0, kind: input, shape index: {}]   ;;  %s1073_s1 = inlined_call_operand.vmem [shape: bf16[16,128], index: 1, kind: input, shape index: {}]   ;;  %s1074_s2 = inlined_call_operand.vmem [shape: f32[2,128], index: 2, kind: input, shape index: {}]   ;;  %s1075_s3 = inlined_call_operand.vmem [shape: f32[128,128], index: 3, kind: input, shape index: {}]   ;;  %s1076_s4 = inlined_call_operand.vmem [shape: f32[2], index: 4, kind: input, shape index: {}]   ;;  %s1077_s5 = inlined_call_operand.vmem [shape: f32[1,128], index: 5, kind: input, shape index: {}]   ;;  %s1078_s6 = inlined_call_operand.vmem [shape: f32[16,128], index: 6, kind: output, shape index: {}]  }
   0x1   :  { %s26_s23 = sshll.u32 %s1076_s4, 4  ;;  %s27_s23 = int_to_ptr.vmem [resolvable:$true] %s26_s23 }
   0x2   :  { %s692_s24 = scalar_lea.vmem %s27_s23, 16  ;;  %p697_p1 = scmp.lt.s32.totalorder %s27_s23, %s27_s23 }
   0x3   :  { %p693_p0 = scmp.ne.s32.totalorder %s27_s23, %s692_s24  ;;  %p698_p2 = scmp.lt.s32.totalorder %s692_s24, %s692_s24 }
   0x5   :  { %p699_p3 = por %p698_p2, %p697_p1 }
   0x7   :  { %p700_p4 = pnand %p699_p3, %p693_p0 }
   0x9   :  { %703 = shalt.err (!%p700_p4)
}
   0xa   :  { %s706_s25 = smov [#allocation5]  }
   0xb   :  { %29 = dma.vmem_to_smem %s27_s23, 16, %s706_s25, [#allocation6]  }
   0xc   :  { %704 = dma.done.wait [#allocation6], 16  }
   0xd   :  { %705 = vsyncadd [#allocation6], 4294967280 }
   0xe   :  { %35 = sfence }
   0xf   :  { %v61_v0 = vld [vmem:[%s1072_s0] sm:$0xff]  ;;  %v62_v1 = vld [vmem:[%s1072_s0 + $0x8] sm:$0xff]  ;;  %v707_v2 = vmov 0   ;;  %v708_v3 = vmov 1   ;;  %v80_v5 = vlaneseq  ;;  %s98_s7 = sld [smem:[#allocation5]]  ;;  %vm709_vm2 = vmmov 1  }
  0x10   :  { %662 = vset.pattern.permute.xlu0 %v707_v2  ;;  %664 = vset.pattern.permute.xlu1 %v707_v2  ;;  %v547_v4 = vld [vmem:[%s1073_s1] sm:$0xff]   ;;  %s512_s0 = sld [smem:[#allocation5 + $0x1]]  ;;  %vm40_vm9 = vcmask 7168   ;;  %v710_v44 = vmov -inf   ;;  %v711_v50 = vmov 0.0   ;;  %v79_v52 = vld [vmem:[%s1075_s3 + $0x78] sm:$0xff] }
  0x11   :  { %84 = vperm.xlu0 %662, %v61_v0   ;;  %89 = vperm.xlu1 %664, %v62_v1   ;;  %v548_v6 = vunpack.c.l.bf16 %v547_v4  ;;  %v549_v7 = vunpack.c.h.bf16 %v547_v4  ;;  %v93_v8 = vshrl.u32 %v80_v5, 7  ;;  %v63_v11 = vld [vmem:[%s1074_s2] sm:$0x3]  ;;  %41 = vst.msk [vmem:[#allocation2] sm:$0xff] %vm40_vm9, %v710_v44  ;;  %42 = vst.msk [vmem:[#allocation2 + $0x8] sm:$0xff] %vm40_vm9, %v710_v44  ;;  %v798_v49 = vand.u32 127, %v80_v5 }
  0x12   :  { %43 = vst.msk [vmem:[#allocation2 + $0x10] sm:$0xff] %vm40_vm9, %v710_v44  ;;  %44 = vst.msk [vmem:[#allocation2 + $0x18] sm:$0xff] %vm40_vm9, %v710_v44  ;;  %v78_v53 = vld [vmem:[%s1075_s3 + $0x70] sm:$0xff]  ;;  %v77_v54 = vld [vmem:[%s1075_s3 + $0x68] sm:$0xff] }
  0x13   :  { %vm55_vm0 = vcmp.ne.f32.partialorder %v548_v6, %v548_v6  ;;  %vm56_vm1 = vcmp.ne.f32.partialorder %v549_v7, %v549_v7  ;;  %v94_v9 = vsub.s32 0, %v93_v8  ;;  %v200_v16 = vsub.s32 1, %v93_v8  ;;  %45 = vst.msk [vmem:[#allocation3] sm:$0xff] %vm40_vm9, %v711_v50  ;;  %46 = vst.msk [vmem:[#allocation3 + $0x8] sm:$0xff] %vm40_vm9, %v711_v50  ;;  %v76_v56 = vld [vmem:[%s1075_s3 + $0x60] sm:$0xff]  ;;  %v75_v59 = vld [vmem:[%s1075_s3 + $0x58] sm:$0xff] }
  0x14   :  { %vm759_vm3 = vmxor %vm55_vm0, %vm709_vm2  ;;  %vm264_vm10 = vcmp.ge.s32.totalorder %v798_v49, 8  ;;  %vm265_vm11 = vcmp.lt.s32.totalorder %v798_v49, 16  ;;  %47 = vst.msk [vmem:[#allocation3 + $0x10] sm:$0xff] %vm40_vm9, %v711_v50  ;;  %vm158_vm12 = vcmp.lt.s32.totalorder %v798_v49, 8  ;;  %v74_v63 = vld [vmem:[%s1075_s3 + $0x50] sm:$0xff]  ;;  %v71_v10 = vld [vmem:[%s1075_s3 + $0x38] sm:$0xff] }
  0x15   :  { %663 = vset.pattern.permute.xlu0 %v708_v3  ;;  %665 = vset.pattern.permute.xlu1 %v708_v3  ;;  %vm766_vm4 = vmxor %vm56_vm1, %vm709_vm2  ;;  %v99_v13 = vstv %s98_s7  ;;  %v59_v14 = vsel %vm759_vm3, %v548_v6, 0.0  ;;  %v95_v15 = vrot.slane %v63_v11, %v94_v9  ;;  %v201_v25 = vrot.slane %v63_v11, %v200_v16  ;;  %48 = vst.msk [vmem:[#allocation3 + $0x18] sm:$0xff] %vm40_vm9, %v711_v50  ;;  %v72_v6 = vld [vmem:[%s1075_s3 + $0x40] sm:$0xff]  ;;  %v70_v12 = vld [vmem:[%s1075_s3 + $0x30] sm:$0xff] }
  0x16   :  { %191 = vperm.xlu0 %663, %v61_v0   ;;  %195 = vperm.xlu1 %665, %v62_v1   ;;  %v60_v17 = vsel %vm766_vm4, %v549_v7, 0.0  ;;  %v100_v18 = vmul.f32 %v99_v13, %v59_v14  ;;  %v205_v22 = vstv %s512_s0  ;;  %vm807_vm13 = vmand %vm264_vm10, %vm265_vm11  ;;  %v67_v16 = vld [vmem:[%s1075_s3 + $0x18] sm:$0xff] }
  0x17   :  { %v101_v24 = vmul.f32 %v99_v13, %v60_v17  ;;  %v206_v27 = vmul.f32 %v205_v22, %v59_v14  ;;  %v207_v28 = vmul.f32 %v205_v22, %v60_v17  ;;  %621 = vmatprep.subr.msk.mxu1 %vm158_vm12, %v79_v52  ;;  %586 = vmatprep.subr.msk.mxu0 %vm807_vm13, %v79_v52  ;;  %v69_v14 = vld [vmem:[%s1075_s3 + $0x28] sm:$0xff]  ;;  %v66_v17 = vld [vmem:[%s1075_s3 + $0x10] sm:$0xff] }
  0x18   :  { %622 = vmatpush3.msk.msra.mxu1 %vm158_vm12, %v79_v52  ;;  %587 = vmatpush3.msk.msra.mxu0 %vm807_vm13, %v79_v52  ;;  %v844_v55 = vld [vmem:[#allocation2] sm:$0xff]  ;;  %v902_v5 = vld [vmem:[#allocation2 + $0x8] sm:$0xff] }
  0x19   :  { %623 = vmatprep.subr.msk.mxu1 %vm158_vm12, %v78_v53  ;;  %588 = vmatprep.subr.msk.mxu0 %vm807_vm13, %v78_v53  ;;  %v872_v61 = vld [vmem:[#allocation2 + $0x10] sm:$0xff]  ;;  %v874_v62 = vld [vmem:[#allocation2 + $0x18] sm:$0xff] }
  0x1a   :  { %666 = vset.pattern.permute.xlu0 %v707_v2  ;;  %667 = vset.pattern.permute.xlu1 %v707_v2  ;;  %v73_v2 = vld [vmem:[%s1075_s3 + $0x48] sm:$0xff]  ;;  %v142_v44 = vld [vmem:[#allocation3] sm:$0xff] }
  0x1b   :  { %624 = vmatpush3.msk.msra.mxu1 %vm158_vm12, %v78_v53  ;;  %589 = vmatpush3.msk.msra.mxu0 %vm807_vm13, %v78_v53  ;;  %v143_v53 = vld [vmem:[#allocation3 + $0x8] sm:$0xff] }
  0x1c   :  { %625 = vmatprep.subr.msk.mxu1 %vm158_vm12, %v77_v54  ;;  %590 = vmatprep.subr.msk.mxu0 %vm807_vm13, %v77_v54 }
  0x1d   :  { %626 = vmatpush3.msk.msra.mxu1 %vm158_vm12, %v77_v54  ;;  %591 = vmatpush3.msk.msra.mxu0 %vm807_vm13, %v77_v54 }
  0x1e   :  { %627 = vmatprep.subr.msk.mxu1 %vm158_vm12, %v76_v56  ;;  %592 = vmatprep.subr.msk.mxu0 %vm807_vm13, %v76_v56 }
  0x1f   :  { %628 = vmatpush3.msk.msra.mxu1 %vm158_vm12, %v76_v56  ;;  %593 = vmatpush3.msk.msra.mxu0 %vm807_vm13, %v76_v56 }
  0x20   :  { %629 = vmatprep.subr.msk.mxu1 %vm158_vm12, %v75_v59  ;;  %594 = vmatprep.subr.msk.mxu0 %vm807_vm13, %v75_v59 }
  0x21   :  { %630 = vmatpush3.msk.msra.mxu1 %vm158_vm12, %v75_v59  ;;  %595 = vmatpush3.msk.msra.mxu0 %vm807_vm13, %v75_v59 }
  0x22   :  { %631 = vmatprep.subr.msk.mxu1 %vm158_vm12, %v74_v63  ;;  %596 = vmatprep.subr.msk.mxu0 %vm807_vm13, %v74_v63 }
  0x23   :  { %632 = vmatpush3.msk.msra.mxu1 %vm158_vm12, %v74_v63  ;;  %597 = vmatpush3.msk.msra.mxu0 %vm807_vm13, %v74_v63 }
  0x24   :  { %633 = vmatprep.subr.msk.mxu1 %vm158_vm12, %v73_v2  ;;  %598 = vmatprep.subr.msk.mxu0 %vm807_vm13, %v73_v2 }
  0x25   :  { %634 = vmatpush3.msk.msra.mxu1 %vm158_vm12, %v73_v2  ;;  %599 = vmatpush3.msk.msra.mxu0 %vm807_vm13, %v73_v2 }
  0x26   :  { %635 = vmatprep.subr.msk.mxu1 %vm158_vm12, %v72_v6  ;;  %600 = vmatprep.subr.msk.mxu0 %vm807_vm13, %v72_v6 }
  0x27   :  { %636 = vmatpush3.msk.msra.mxu1 %vm158_vm12, %v72_v6  ;;  %601 = vmatpush3.msk.msra.mxu0 %vm807_vm13, %v72_v6 }
  0x28   :  { %637 = vmatprep.subr.msk.mxu1 %vm158_vm12, %v71_v10  ;;  %602 = vmatprep.subr.msk.mxu0 %vm807_vm13, %v71_v10 }
  0x29   :  { %638 = vmatpush3.msk.msra.mxu1 %vm158_vm12, %v71_v10  ;;  %603 = vmatpush3.msk.msra.mxu0 %vm807_vm13, %v71_v10 }
  0x2a   :  { %639 = vmatprep.subr.msk.mxu1 %vm158_vm12, %v70_v12  ;;  %604 = vmatprep.subr.msk.mxu0 %vm807_vm13, %v70_v12 }
  0x2b   :  { %640 = vmatpush3.msk.msra.mxu1 %vm158_vm12, %v70_v12  ;;  %605 = vmatpush3.msk.msra.mxu0 %vm807_vm13, %v70_v12 }
  0x2c   :  { %641 = vmatprep.subr.msk.mxu1 %vm158_vm12, %v69_v14  ;;  %606 = vmatprep.subr.msk.mxu0 %vm807_vm13, %v69_v14 }
  0x2d   :  { %642 = vmatpush3.msk.msra.mxu1 %vm158_vm12, %v69_v14  ;;  %607 = vmatpush3.msk.msra.mxu0 %vm807_vm13, %v69_v14 }
  0x8c   :  { %v85_v19 = vpop.permute.xlu0 %84  ;;  %v90_v20 = vpop.permute.xlu1 %89 }
  0x8d   :  { %v96_v21 = vadd.f32 %v95_v15, %v85_v19  ;;  %v97_v23 = vadd.f32 %v95_v15, %v90_v20  ;;  %v68_v15 = vld [vmem:[%s1075_s3 + $0x20] sm:$0xff] }
  0x8e   :  { %643 = vmatprep.subr.msk.mxu1 %vm158_vm12, %v68_v15  ;;  %608 = vmatprep.subr.msk.mxu0 %vm807_vm13, %v68_v15  ;;  %v64_v19 = vld [vmem:[%s1075_s3] sm:$0xff] }
  0x8f   :  { %v102_v26 = vadd.f32 %v100_v18, %v96_v21  ;;  %v103_v30 = vadd.f32 %v101_v24, %v97_v23  ;;  %644 = vmatpush3.msk.msra.mxu1 %vm158_vm12, %v68_v15  ;;  %609 = vmatpush3.msk.msra.mxu0 %vm807_vm13, %v68_v15  ;;  %v65_v18 = vld [vmem:[%s1075_s3 + $0x8] sm:$0xff] }
  0x90   :  { %645 = vmatprep.subr.msk.mxu1 %vm158_vm12, %v67_v16  ;;  %610 = vmatprep.subr.msk.mxu0 %vm807_vm13, %v67_v16 }
  0x91   :  { %v192_v29 = vpop.permute.xlu0 %191  ;;  %vm104_vm5 = vcmp.gt.f32.partialorder %v102_v26, 0.0  ;;  %v106_v31 = vmul.f32 0.2, %v102_v26  ;;  %v196_v32 = vpop.permute.xlu1 %195  ;;  %v107_v39 = vmul.f32 0.2, %v103_v30  ;;  %vm105_vm8 = vcmp.gt.f32.partialorder %v103_v30, 0.0  ;;  %646 = vmatpush3.msk.msra.mxu1 %vm158_vm12, %v67_v16  ;;  %611 = vmatpush3.msk.msra.mxu0 %vm807_vm13, %v67_v16 }
  0x92   :  { %v202_v33 = vadd.f32 %v201_v25, %v192_v29  ;;  %v203_v34 = vadd.f32 %v201_v25, %v196_v32  ;;  %647 = vmatprep.subr.msk.mxu1 %vm158_vm12, %v66_v17  ;;  %612 = vmatprep.subr.msk.mxu0 %vm807_vm13, %v66_v17 }
  0x93   :  { %v108_v35 = vsel %vm104_vm5, %v102_v26, %v106_v31  ;;  %v109_v47 = vsel %vm105_vm8, %v103_v30, %v107_v39  ;;  %648 = vmatpush3.msk.msra.mxu1 %vm158_vm12, %v66_v17  ;;  %613 = vmatpush3.msk.msra.mxu0 %vm807_vm13, %v66_v17 }
  0x94   :  { %v208_v36 = vadd.f32 %v206_v27, %v202_v33  ;;  %v776_v37 = vsel %vm759_vm3, %v108_v35, -1e+30  ;;  %v209_v38 = vadd.f32 %v207_v28, %v203_v34  ;;  %v795_v48 = vsel %vm766_vm4, %v109_v47, -1e+30  ;;  %649 = vmatprep.subr.msk.mxu1 %vm158_vm12, %v65_v18  ;;  %614 = vmatprep.subr.msk.mxu0 %vm807_vm13, %v65_v18 }
  0x95   :  { %114 = vmax.xlane.f32.xlu1 %v776_v37  ;;  %650 = vmatpush3.msk.msra.mxu1 %vm158_vm12, %v65_v18 }
  0x96   :  { %vm210_vm6 = vcmp.gt.f32.partialorder %v208_v36, 0.0  ;;  %v212_v40 = vmul.f32 0.2, %v208_v36  ;;  %vm211_vm7 = vcmp.gt.f32.partialorder %v209_v38, 0.0  ;;  %v213_v41 = vmul.f32 0.2, %v209_v38  ;;  %651 = vmatprep.subr.msk.mxu1 %vm158_vm12, %v64_v19  ;;  %615 = vmatpush3.msk.msra.mxu0 %vm807_vm13, %v65_v18 }
  0x97   :  { %652 = vmatpush3.msk.msra.mxu1 %vm158_vm12, %v64_v19  ;;  %616 = vmatprep.subr.msk.mxu0 %vm807_vm13, %v64_v19 }
  0x98   :  { %v214_v42 = vsel %vm210_vm6, %v208_v36, %v212_v40  ;;  %v215_v43 = vsel %vm211_vm7, %v209_v38, %v213_v41  ;;  %617 = vmatpush3.msk.msra.mxu0 %vm807_vm13, %v64_v19 }
  0x99   :  { %v785_v45 = vsel %vm759_vm3, %v214_v42, -1e+30  ;;  %v789_v46 = vsel %vm766_vm4, %v215_v43, -1e+30 }
  0x9a   :  { %221 = vmax.xlane.f32.xlu0 %v785_v45  ;;  %223 = vmax.xlane.f32.xlu1 %v789_v46 }
  0x9e   :  { %116 = vmax.xlane.f32.xlu0 %v795_v48 }
 0x11e   :  { %v115_v57 = vpop.xlane.xlu1 %114 }
 0x11f   :  { %v854_v58 = vmax.f32 %v844_v55, %v115_v57  ;;  %v251_v57 = vld [vmem:[#allocation3 + $0x18] sm:$0xff] }
 0x121   :  { %v120_v60 = vsub.f32 %v844_v55, %v854_v58  ;;  %155 = vst.msk [vmem:[#allocation2] sm:$0xff] %vm40_vm9, %v854_v58  ;;  %128 = vperm.xlu0 %666, %v854_v58  }
 0x123   :  { %v222_v0 = vpop.xlane.xlu0 %221  ;;  %v224_v1 = vpop.xlane.xlu1 %223  ;;  %v122_v36 = vmul.f32 1.442695, %v120_v60 }
 0x124   :  { %v893_v3 = vmax.f32 %v872_v61, %v222_v0  ;;  %v896_v4 = vmax.f32 %v874_v62, %v224_v1 }
 0x126   :  { %v227_v7 = vsub.f32 %v872_v61, %v893_v3  ;;  %262 = vst.msk [vmem:[#allocation2 + $0x10] sm:$0xff] %vm40_vm9, %v893_v3  ;;  %235 = vperm.xlu1 %667, %v893_v3   ;;  %v228_v8 = vsub.f32 %v874_v62, %v896_v4  ;;  %263 = vst.msk [vmem:[#allocation2 + $0x18] sm:$0xff] %vm40_vm9, %v896_v4 }
 0x127   :  { %v117_v9 = vpop.xlane.xlu0 %116 }
 0x128   :  { %v930_v11 = vmax.f32 %v902_v5, %v117_v9  ;;  %v229_v38 = vmul.f32 1.442695, %v227_v7  ;;  %v231_v39 = vmul.f32 1.442695, %v228_v8 }
 0x12a   :  { %v121_v13 = vsub.f32 %v902_v5, %v930_v11  ;;  %156 = vst.msk [vmem:[#allocation2 + $0x8] sm:$0xff] %vm40_vm9, %v930_v11  ;;  %133 = vperm.xlu1 %667, %v930_v11  }
 0x12e   :  { %240 = vperm.xlu1 %667, %v896_v4  }
 0x19c   :  { %v129_v20 = vpop.permute.xlu0 %128 }
 0x19d   :  { %v136_v21 = vsub.f32 %v776_v37, %v129_v20  ;;  %v124_v37 = vmul.f32 1.442695, %v121_v13 }
 0x19f   :  { %v138_v22 = vmul.f32 1.442695, %v136_v21 }
 0x1a1   :  { %668 = vpow2.f32 %v138_v22  ;;  %v236_v23 = vpop.permute.xlu1 %235  ;;  %v545_v22 = vld [vmem:[%s1077_s5] ss:$0 sm:$0xff] }
 0x1a2   :  { %v243_v24 = vsub.f32 %v785_v45, %v236_v23 }
 0x1a4   :  { %v245_v25 = vmul.f32 1.442695, %v243_v24 }
 0x1a5   :  { %v134_v26 = vpop.permute.xlu1 %133 }
 0x1a6   :  { %670 = vpow2.f32 %v245_v25  ;;  %v137_v27 = vsub.f32 %v795_v48, %v134_v26  ;;  %v250_v48 = vld [vmem:[#allocation3 + $0x10] sm:$0xff] }
 0x1a8   :  { %v140_v28 = vmul.f32 1.442695, %v137_v27 }
 0x1a9   :  { %v241_v29 = vpop.permute.xlu1 %240 }
 0x1aa   :  { %672 = vpow2.f32 %v140_v28  ;;  %v244_v30 = vsub.f32 %v789_v46, %v241_v29 }
 0x1ac   :  { %v247_v31 = vmul.f32 1.442695, %v244_v30 }
 0x1ae   :  { %v669_v32 = vpop.eup %668  ;;  %674 = vpow2.f32 %v247_v31 }
 0x1af   :  { %146 = vadd.xlane.f32.xlu1 %v669_v32  ;;  %653 = vmatprep.mubr.f32.mxu1 %v669_v32  ;;  %676 = vpow2.f32 %v122_v36 }
 0x1b0   :  { %678 = vpow2.f32 %v124_v37 }
 0x1b1   :  { %680 = vpow2.f32 %v229_v38 }
 0x1b2   :  { %682 = vpow2.f32 %v231_v39 }
 0x1b3   :  { %v671_v33 = vpop.eup %670 }
 0x1b4   :  { %618 = vmatprep.mubr.f32.mxu0 %v671_v33  ;;  %254 = vadd.xlane.f32.xlu1 %v671_v33 }
 0x1b7   :  { %v673_v34 = vpop.eup %672 }
 0x1b8   :  { %148 = vadd.xlane.f32.xlu0 %v673_v34  ;;  %654 = vmatmul.mubr.f32.vlgmr.msra.gmra.mxu1 %v673_v34 }
 0x1bb   :  { %v675_v35 = vpop.eup %674 }
 0x1bc   :  { %619 = vmatmul.mubr.f32.vlgmr.msra.gmra.mxu0 %v675_v35  ;;  %256 = vadd.xlane.f32.xlu1 %v675_v35  ;;  %v677_v40 = vpop.eup %676 }
 0x1bd   :  { %v679_v41 = vpop.eup %678  ;;  %v144_v45 = vmul.f32 %v677_v40, %v142_v44 }
 0x1be   :  { %v681_v42 = vpop.eup %680  ;;  %v145_v55 = vmul.f32 %v679_v41, %v143_v53 }
 0x1bf   :  { %v683_v43 = vpop.eup %682  ;;  %v252_v50 = vmul.f32 %v681_v42, %v250_v48 }
 0x1c0   :  { %v253_v60 = vmul.f32 %v683_v43, %v251_v57 }
 0x1cd   :  { %180 = vperm.xlu1 %667, %v677_v40  }
 0x1ce   :  { %185 = vperm.xlu0 %666, %v679_v41  }
 0x1d1   :  { %287 = vperm.xlu1 %667, %v681_v42  }
 0x1d5   :  { %292 = vperm.xlu1 %667, %v683_v43  }
 0x238   :  { %v147_v46 = vpop.xlane.xlu1 %146 }
 0x239   :  { %v150_v47 = vadd.f32 %v147_v46, %v144_v45 }
 0x23b   :  { %153 = vst.msk [vmem:[#allocation3] sm:$0xff] %vm40_vm9, %v150_v47 }
 0x23d   :  { %v255_v52 = vpop.xlane.xlu1 %254 }
 0x23e   :  { %v258_v54 = vadd.f32 %v255_v52, %v252_v50 }
 0x240   :  { %260 = vst.msk [vmem:[#allocation3 + $0x10] sm:$0xff] %vm40_vm9, %v258_v54 }
 0x241   :  { %v149_v56 = vpop.xlane.xlu0 %148 }
 0x242   :  { %v151_v58 = vadd.f32 %v149_v56, %v145_v55  ;;  %v458_v59 = vld [vmem:[#allocation3] sm:$0xff] }
 0x243   :  { %684 = vrcp.f32 %v458_v59 }
 0x244   :  { %154 = vst.msk [vmem:[#allocation3 + $0x8] sm:$0xff] %vm40_vm9, %v151_v58 }
 0x245   :  { %v257_v61 = vpop.xlane.xlu1 %256 }
 0x246   :  { %v259_v62 = vadd.f32 %v257_v61, %v253_v60 }
 0x247   :  { %v474_v63 = vld [vmem:[#allocation3 + $0x10] sm:$0xff] }
 0x248   :  { %261 = vst.msk [vmem:[#allocation3 + $0x18] sm:$0xff] %vm40_vm9, %v259_v62  ;;  %686 = vrcp.f32 %v474_v63 }
 0x249   :  { %v181_v6 = vpop.permute.xlu1 %180  ;;  %v186_v18 = vpop.permute.xlu0 %185 }
 0x24a   :  { %v188_v12 = vsel %vm158_vm12, %v181_v6, 1.0  ;;  %v189_v24 = vsel %vm158_vm12, %v186_v18, 1.0 }
 0x24b   :  { %v459_v0 = vld [vmem:[#allocation3 + $0x8] sm:$0xff] }
 0x24c   :  { %688 = vrcp.f32 %v459_v0 }
 0x24d   :  { %v288_v7 = vpop.permute.xlu1 %287 }
 0x24e   :  { %v295_v13 = vsel %vm807_vm13, %v288_v7, %v188_v12 }
 0x24f   :  { %v475_v1 = vld [vmem:[#allocation3 + $0x18] sm:$0xff]  ;;  %v449_v17 = vmul.f32 0.0, %v295_v13 }
 0x250   :  { %v685_v2 = vpop.eup %684  ;;  %690 = vrcp.f32 %v475_v1 }
 0x251   :  { %464 = vperm.xlu1 %667, %v685_v2   ;;  %v293_v9 = vpop.permute.xlu1 %292 }
 0x252   :  { %v296_v26 = vsel %vm807_vm13, %v293_v9, %v189_v24 }
 0x253   :  { %v450_v30 = vmul.f32 0.0, %v296_v26 }
 0x255   :  { %v687_v3 = vpop.eup %686 }
 0x256   :  { %480 = vperm.xlu1 %667, %v687_v3  }
 0x259   :  { %v689_v4 = vpop.eup %688 }
 0x25a   :  { %469 = vperm.xlu0 %666, %v689_v4  }
 0x25d   :  { %v691_v5 = vpop.eup %690 }
 0x25e   :  { %485 = vperm.xlu0 %666, %v691_v5  }
 0x278   :  { %v655_v10 = vpop.f32.mrf.mxu1 }
 0x27a   :  { %v438_v14 = vpop.f32.mrf.mxu1 }
 0x27c   :  { %v620_v8 = vpop.f32.mrf.mxu0 }
 0x27d   :  { %v444_v27 = vadd.f32 %v655_v10, %v620_v8 }
 0x27e   :  { %v363_v11 = vpop.f32.mrf.mxu0 }
 0x27f   :  { %v439_v16 = vadd.f32 %v438_v14, %v363_v11  ;;  %v452_v32 = vadd.f32 %v450_v30, %v444_v27 }
 0x281   :  { %v451_v19 = vadd.f32 %v449_v17, %v439_v16 }
 0x2cc   :  { %v465_v15 = vpop.permute.xlu1 %464 }
 0x2cd   :  { %v472_v20 = vsel %vm158_vm12, %v465_v15, 1.0 }
 0x2d1   :  { %v481_v21 = vpop.permute.xlu1 %480 }
 0x2d2   :  { %v488_v23 = vsel %vm807_vm13, %v481_v21, %v472_v20 }
 0x2d3   :  { %v492_v25 = vmul.f32 %v488_v23, %v451_v19 }
 0x2d5   :  { %v501_v28 = vadd.f32 %v545_v22, %v492_v25  ;;  %v470_v29 = vpop.permute.xlu0 %469 }
 0x2d6   :  { %v473_v33 = vsel %vm158_vm12, %v470_v29, 1.0 }
 0x2d7   :  { %v503_v31 = vmax.f32 %v501_v28, 0.0 }
 0x2d9   :  { %505 = vst [vmem:[%s1078_s6] sm:$0xff] %v503_v31  ;;  %v486_v34 = vpop.permute.xlu0 %485 }
 0x2da   :  { %v489_v35 = vsel %vm807_vm13, %v486_v34, %v473_v33 }
 0x2db   :  { %v493_v36 = vmul.f32 %v489_v35, %v452_v32 }
 0x2dd   :  { %v502_v37 = vadd.f32 %v545_v22, %v493_v36 }
 0x2df   :  { %v504_v38 = vmax.f32 %v502_v37, 0.0 }
 0x2e1   :  { %506 = vst [vmem:[%s1078_s6 + $0x8] sm:$0xff] %v504_v38 }
 0x2e2   :  { %511 = vsyncpa [#allocation6], 1 }

</bundles_post_ra>
